<compile_context>
chip_gen: v7x
topology: tpu7x:2x2x1
jax: 0.10.0
libtpu: 0.0.40
codegen_flags: <defaults>
</compile_context>

<pallas_src>
import functools

import numpy as np

import jax
import jax.numpy as jnp
from jax.experimental import pallas as pl
from jax.experimental.pallas import tpu as pltpu


# ----------------------------------------------------------------------------
# The single fused Pallas kernel
# ----------------------------------------------------------------------------
def _discriminator_kernel(*refs, n_blocks, negative_slope):
    """refs = [x2d, (R, B, bias, shift) * n_blocks, P, Wh, adv_b, out]."""
    x_ref = refs[0]
    out_ref = refs[-1]

    a = x_ref[...]                                        # (N*H0, W0*C0) f32
    idx = 1
    for _ in range(n_blocks):
        r_ref, b_ref, bias_ref, shift_ref = refs[idx:idx + 4]
        idx += 4
        # conv(3x3, stride 2, pad 1) * BN_scale  ==  sum_ky (R_ky @ a) @ B_ky
        z = None
        for ky in range(3):                               # 3 height taps
            rows = jnp.dot(r_ref[ky], a, preferred_element_type=jnp.float32)
            part = jnp.dot(rows, b_ref[ky], preferred_element_type=jnp.float32)
            z = part if z is None else z + part
        z = z + bias_ref[...]                             # conv bias * BN scale
        z = jnp.where(z >= 0.0, z, negative_slope * z)    # LeakyReLU(0.2)
        # Dropout2d(0.25): identity in eval mode.
        a = z + shift_ref[...]                            # BN shift (scale folded)

    # Linear(feat, 1) + Sigmoid head: select the (n, h) rows, multiply by the
    # pre-permuted adv_w row on the VPU and reduce over the lane axis.
    p_ref, wh_ref, advb_ref = refs[idx:idx + 3]
    acc = None
    for h in range(p_ref.shape[0]):                       # ds_size iterations
        rows = jnp.dot(p_ref[h], a, preferred_element_type=jnp.float32)
        contrib = jnp.sum(rows * wh_ref[h], axis=-1, keepdims=True)
        acc = contrib if acc is None else acc + contrib
    logit = acc + advb_ref[...]
    out_ref[...] = (1.0 / (1.0 + jnp.exp(-logit))).astype(out_ref.dtype)


def _full_spec(arr):
    nd = arr.ndim
    return pl.BlockSpec(arr.shape, lambda i, _nd=nd: (0,) * _nd)


def discriminator_pallas(x2d, params, *, n_batch):
    flat_inputs = [x2d]
    for blk in params["blocks"]:
        flat_inputs.extend(blk)                           # (R, B, bias, shift)
    flat_inputs.extend([params["head_P"], params["head_W"], params["head_b"]])

    kernel = functools.partial(
        _discriminator_kernel,
        n_blocks=len(params["blocks"]),
        negative_slope=0.2,
    )
    return pl.pallas_call(
        kernel,
        out_shape=jax.ShapeDtypeStruct((n_batch, 1), jnp.float32),
        grid=(1,),
        in_specs=[_full_spec(a) for a in flat_inputs],
        out_specs=pl.BlockSpec((n_batch, 1), lambda i: (0, 0)),
        compiler_params=pltpu.CompilerParams(
            dimension_semantics=("arbitrary",)),
    )(*flat_inputs)


# ----------------------------------------------------------------------------
# Parameter construction (deterministic, fresh-module init, BN/weights fused)
# ----------------------------------------------------------------------------
def init_params(key, img_shape, n_batch, eps=0.8):
    c_in, img_size, img_size2 = img_shape
    assert img_size == img_size2
    chans = [c_in, 16, 32, 64, 128]

    h = w = img_size
    blocks = []
    for i in range(4):
        cin, cout = chans[i], chans[i + 1]
        ho, wo = -(-h // 2), -(-w // 2)

        key, kw, kb = jax.random.split(key, 3)
        # conv weight in (ky, kx, cin, cout) layout, bias ~ small random.
        w_conv = np.asarray(jax.random.normal(kw, (3, 3, cin, cout),
                                              jnp.float32)) / np.sqrt(9.0 * cin)
        b_conv = np.asarray(jax.random.normal(kb, (cout,), jnp.float32)) * 0.01

        # Eval-mode BatchNorm2d(cout, eps=0.8) with fresh running stats.
        gamma = np.ones((cout,), np.float32)
        beta = np.zeros((cout,), np.float32)
        r_mean = np.zeros((cout,), np.float32)
        r_var = np.ones((cout,), np.float32)
        scale = gamma / np.sqrt(r_var + eps)              # > 0
        shift_c = beta - r_mean * scale

        # Height-tap row selectors (also implement the zero padding in H).
        R = np.zeros((3, n_batch * ho, n_batch * h), np.float32)
        for ky in range(3):
            for n in range(n_batch):
                for oy in range(ho):
                    hin = 2 * oy + ky - 1
                    if 0 <= hin < h:
                        R[ky, n * ho + oy, n * h + hin] = 1.0

        # Width-tap gather + channel mix, with the BN scale folded in.
        B = np.zeros((3, w * cin, wo * cout), np.float32)
        for ky in range(3):
            for ox in range(wo):
                for kx in range(3):
                    win = 2 * ox + kx - 1
                    if 0 <= win < w:
                        B[ky, win * cin:(win + 1) * cin,
                          ox * cout:(ox + 1) * cout] += (
                              w_conv[ky, kx] * scale[None, :])

        bias = np.tile((b_conv * scale)[None, :], (1, wo))    # (1, wo*cout)
        shift = np.tile(shift_c[None, :], (1, wo))            # (1, wo*cout)

        blocks.append((jnp.asarray(R), jnp.asarray(B),
                       jnp.asarray(bias), jnp.asarray(shift)))
        h, w = ho, wo

    # Head: Linear(128 * ds^2, 1) + Sigmoid.  ds == ceil(img_size / 16).
    c4 = chans[-1]
    ds_h, ds_w = h, w
    feat = c4 * ds_h * ds_w
    key, kl, klb = jax.random.split(key, 3)
    adv_w = np.asarray(jax.random.normal(kl, (1, feat),
                                         jnp.float32)) / np.sqrt(feat)
    adv_b = np.asarray(jax.random.normal(klb, (1,), jnp.float32)) * 0.01

    # Row selector picking the (n, h) rows of the final (N*ds, ds*128) slab.
    P = np.zeros((ds_h, n_batch, n_batch * ds_h), np.float32)
    for hh in range(ds_h):
        for n in range(n_batch):
            P[hh, n, n * ds_h + hh] = 1.0

    # adv_w permuted from torch's (C, H, W) flatten order to our (W, C) lanes.
    Wh = np.zeros((ds_h, 1, ds_w * c4), np.float32)
    for hh in range(ds_h):
        for ww in range(ds_w):
            for cc in range(c4):
                Wh[hh, 0, ww * c4 + cc] = adv_w[0, cc * ds_h * ds_w
                                                + hh * ds_w + ww]

    return {
        "blocks": blocks,
        "head_P": jnp.asarray(P),
        "head_W": jnp.asarray(Wh),
        "head_b": jnp.asarray(adv_b.reshape(1, 1)),
    }


# ----------------------------------------------------------------------------
# Full forward
# ----------------------------------------------------------------------------
@jax.jit
def discriminator_forward(img_nchw, params):
    n, c, h, w = img_nchw.shape
    # NCHW -> (N*H, W*C): rows index (n, h), lanes index (w, c).  One tiny
    # relayout of the 8 KB input; everything downstream is inside one kernel.
    x2d = jnp.transpose(img_nchw, (0, 2, 3, 1)).reshape(n * h, w * c)
    return discriminator_pallas(x2d, params, n_batch=n)


if __name__ == "__main__":
    key = jax.random.PRNGKey(0)
    img_shape = (4, 16, 16)                               # (C, H, W)
    batch = 2

    key, k_img, k_par = jax.random.split(key, 3)
    img = jax.random.normal(k_img, (batch,) + img_shape, jnp.float32)
    params = init_params(k_par, img_shape, n_batch=batch)

    out = discriminator_forward(img, params)
    out = jax.block_until_ready(out)

    assert out.shape == (batch, 1), out.shape
    assert bool(jnp.all(jnp.isfinite(out)))
    assert bool(jnp.all((out >= 0.0) & (out <= 1.0)))     # sigmoid range
    print("KERNEL_OK")
</pallas_src>

<mosaic_0001>
module attributes {stable_mosaic.version = 11 : i64} {
  func.func @_discriminator_kernel(%arg0: i32, %arg1: memref<32x64xf32, #tpu.memory_space<vmem>>, %arg2: memref<3x16x32xf32, #tpu.memory_space<vmem>>, %arg3: memref<3x64x128xf32, #tpu.memory_space<vmem>>, %arg4: memref<1x128xf32, #tpu.memory_space<vmem>>, %arg5: memref<1x128xf32, #tpu.memory_space<vmem>>, %arg6: memref<3x8x16xf32, #tpu.memory_space<vmem>>, %arg7: memref<3x128x128xf32, #tpu.memory_space<vmem>>, %arg8: memref<1x128xf32, #tpu.memory_space<vmem>>, %arg9: memref<1x128xf32, #tpu.memory_space<vmem>>, %arg10: memref<3x4x8xf32, #tpu.memory_space<vmem>>, %arg11: memref<3x128x128xf32, #tpu.memory_space<vmem>>, %arg12: memref<1x128xf32, #tpu.memory_space<vmem>>, %arg13: memref<1x128xf32, #tpu.memory_space<vmem>>, %arg14: memref<3x2x4xf32, #tpu.memory_space<vmem>>, %arg15: memref<3x128x128xf32, #tpu.memory_space<vmem>>, %arg16: memref<1x128xf32, #tpu.memory_space<vmem>>, %arg17: memref<1x128xf32, #tpu.memory_space<vmem>>, %arg18: memref<1x2x2xf32, #tpu.memory_space<vmem>>, %arg19: memref<1x1x128xf32, #tpu.memory_space<vmem>>, %arg20: memref<1x1xf32, #tpu.memory_space<vmem>>, %arg21: memref<2x1xf32, #tpu.memory_space<vmem>>) attributes {dimension_semantics = [#tpu.dimension_semantics<arbitrary>], iteration_bounds = array<i64: 1>, scalar_prefetch = 0 : i64, scratch_operands = 0 : i64, tpu.core_type = #tpu.core_type<tc>, window_params = [{pipeline_mode = #tpu.pipeline_mode<synchronous>, transform_indices = @transform_0, window_bounds = array<i64: 32, 64>}, {pipeline_mode = #tpu.pipeline_mode<synchronous>, transform_indices = @transform_1, window_bounds = array<i64: 3, 16, 32>}, {pipeline_mode = #tpu.pipeline_mode<synchronous>, transform_indices = @transform_2, window_bounds = array<i64: 3, 64, 128>}, {pipeline_mode = #tpu.pipeline_mode<synchronous>, transform_indices = @transform_3, window_bounds = array<i64: 1, 128>}, {pipeline_mode = #tpu.pipeline_mode<synchronous>, transform_indices = @transform_4, window_bounds = array<i64: 1, 128>}, {pipeline_mode = #tpu.pipeline_mode<synchronous>, transform_indices = @transform_5, window_bounds = array<i64: 3, 8, 16>}, {pipeline_mode = #tpu.pipeline_mode<synchronous>, transform_indices = @transform_6, window_bounds = array<i64: 3, 128, 128>}, {pipeline_mode = #tpu.pipeline_mode<synchronous>, transform_indices = @transform_7, window_bounds = array<i64: 1, 128>}, {pipeline_mode = #tpu.pipeline_mode<synchronous>, transform_indices = @transform_8, window_bounds = array<i64: 1, 128>}, {pipeline_mode = #tpu.pipeline_mode<synchronous>, transform_indices = @transform_9, window_bounds = array<i64: 3, 4, 8>}, {pipeline_mode = #tpu.pipeline_mode<synchronous>, transform_indices = @transform_10, window_bounds = array<i64: 3, 128, 128>}, {pipeline_mode = #tpu.pipeline_mode<synchronous>, transform_indices = @transform_11, window_bounds = array<i64: 1, 128>}, {pipeline_mode = #tpu.pipeline_mode<synchronous>, transform_indices = @transform_12, window_bounds = array<i64: 1, 128>}, {pipeline_mode = #tpu.pipeline_mode<synchronous>, transform_indices = @transform_13, window_bounds = array<i64: 3, 2, 4>}, {pipeline_mode = #tpu.pipeline_mode<synchronous>, transform_indices = @transform_14, window_bounds = array<i64: 3, 128, 128>}, {pipeline_mode = #tpu.pipeline_mode<synchronous>, transform_indices = @transform_15, window_bounds = array<i64: 1, 128>}, {pipeline_mode = #tpu.pipeline_mode<synchronous>, transform_indices = @transform_16, window_bounds = array<i64: 1, 128>}, {pipeline_mode = #tpu.pipeline_mode<synchronous>, transform_indices = @transform_17, window_bounds = array<i64: 1, 2, 2>}, {pipeline_mode = #tpu.pipeline_mode<synchronous>, transform_indices = @transform_18, window_bounds = array<i64: 1, 1, 128>}, {pipeline_mode = #tpu.pipeline_mode<synchronous>, transform_indices = @transform_19, window_bounds = array<i64: 1, 1>}, {pipeline_mode = #tpu.pipeline_mode<synchronous>, transform_indices = @transform_20, window_bounds = array<i64: 2, 1>}]} {
    %c0 = arith.constant 0 : index
    %c0_0 = arith.constant 0 : index
    %0 = vector.load %arg1[%c0, %c0_0] : memref<32x64xf32, #tpu.memory_space<vmem>>, vector<32x64xf32>
    %c0_1 = arith.constant 0 : index
    %c0_2 = arith.constant 0 : index
    %c0_3 = arith.constant 0 : index
    %1 = vector.load %arg2[%c0_1, %c0_2, %c0_3] : memref<3x16x32xf32, #tpu.memory_space<vmem>>, vector<1x16x32xf32>
    %2 = vector.shape_cast %1 : vector<1x16x32xf32> to vector<16x32xf32>
    %cst = arith.constant dense<0.000000e+00> : vector<16x64xf32>
    %3 = tpu.matmul %2, %0, %cst {dimension_numbers = #tpu.dot_dimension_numbers<[1], [0], [0], [1], [0, 0, 1, 1], [], []>} : vector<16x32xf32>, vector<32x64xf32>, vector<16x64xf32> -> vector<16x64xf32>
    %c0_4 = arith.constant 0 : index
    %c0_5 = arith.constant 0 : index
    %c0_6 = arith.constant 0 : index
    %4 = vector.load %arg3[%c0_4, %c0_5, %c0_6] : memref<3x64x128xf32, #tpu.memory_space<vmem>>, vector<1x64x128xf32>
    %5 = vector.shape_cast %4 : vector<1x64x128xf32> to vector<64x128xf32>
    %cst_7 = arith.constant dense<0.000000e+00> : vector<16x128xf32>
    %6 = tpu.matmul %3, %5, %cst_7 {dimension_numbers = #tpu.dot_dimension_numbers<[1], [0], [0], [1], [0, 0, 1, 1], [], []>} : vector<16x64xf32>, vector<64x128xf32>, vector<16x128xf32> -> vector<16x128xf32>
    %c1 = arith.constant 1 : index
    %c0_8 = arith.constant 0 : index
    %c0_9 = arith.constant 0 : index
    %7 = vector.load %arg2[%c1, %c0_8, %c0_9] : memref<3x16x32xf32, #tpu.memory_space<vmem>>, vector<1x16x32xf32>
    %8 = vector.shape_cast %7 : vector<1x16x32xf32> to vector<16x32xf32>
    %cst_10 = arith.constant dense<0.000000e+00> : vector<16x64xf32>
    %9 = tpu.matmul %8, %0, %cst_10 {dimension_numbers = #tpu.dot_dimension_numbers<[1], [0], [0], [1], [0, 0, 1, 1], [], []>} : vector<16x32xf32>, vector<32x64xf32>, vector<16x64xf32> -> vector<16x64xf32>
    %c1_11 = arith.constant 1 : index
    %c0_12 = arith.constant 0 : index
    %c0_13 = arith.constant 0 : index
    %10 = vector.load %arg3[%c1_11, %c0_12, %c0_13] : memref<3x64x128xf32, #tpu.memory_space<vmem>>, vector<1x64x128xf32>
    %11 = vector.shape_cast %10 : vector<1x64x128xf32> to vector<64x128xf32>
    %cst_14 = arith.constant dense<0.000000e+00> : vector<16x128xf32>
    %12 = tpu.matmul %9, %11, %cst_14 {dimension_numbers = #tpu.dot_dimension_numbers<[1], [0], [0], [1], [0, 0, 1, 1], [], []>} : vector<16x64xf32>, vector<64x128xf32>, vector<16x128xf32> -> vector<16x128xf32>
    %13 = arith.addf %6, %12 : vector<16x128xf32>
    %c2 = arith.constant 2 : index
    %c0_15 = arith.constant 0 : index
    %c0_16 = arith.constant 0 : index
    %14 = vector.load %arg2[%c2, %c0_15, %c0_16] : memref<3x16x32xf32, #tpu.memory_space<vmem>>, vector<1x16x32xf32>
    %15 = vector.shape_cast %14 : vector<1x16x32xf32> to vector<16x32xf32>
    %cst_17 = arith.constant dense<0.000000e+00> : vector<16x64xf32>
    %16 = tpu.matmul %15, %0, %cst_17 {dimension_numbers = #tpu.dot_dimension_numbers<[1], [0], [0], [1], [0, 0, 1, 1], [], []>} : vector<16x32xf32>, vector<32x64xf32>, vector<16x64xf32> -> vector<16x64xf32>
    %c2_18 = arith.constant 2 : index
    %c0_19 = arith.constant 0 : index
    %c0_20 = arith.constant 0 : index
    %17 = vector.load %arg3[%c2_18, %c0_19, %c0_20] : memref<3x64x128xf32, #tpu.memory_space<vmem>>, vector<1x64x128xf32>
    %18 = vector.shape_cast %17 : vector<1x64x128xf32> to vector<64x128xf32>
    %cst_21 = arith.constant dense<0.000000e+00> : vector<16x128xf32>
    %19 = tpu.matmul %16, %18, %cst_21 {dimension_numbers = #tpu.dot_dimension_numbers<[1], [0], [0], [1], [0, 0, 1, 1], [], []>} : vector<16x64xf32>, vector<64x128xf32>, vector<16x128xf32> -> vector<16x128xf32>
    %20 = arith.addf %13, %19 : vector<16x128xf32>
    %c0_22 = arith.constant 0 : index
    %c0_23 = arith.constant 0 : index
    %21 = vector.load %arg4[%c0_22, %c0_23] : memref<1x128xf32, #tpu.memory_space<vmem>>, vector<1x128xf32>
    %22 = vector.broadcast %21 : vector<1x128xf32> to vector<16x128xf32>
    %23 = arith.addf %20, %22 : vector<16x128xf32>
    %cst_24 = arith.constant 0.000000e+00 : f32
    %24 = vector.broadcast %cst_24 : f32 to vector<16x128xf32>
    %25 = arith.cmpf oge, %23, %24 : vector<16x128xf32>
    %cst_25 = arith.constant 2.000000e-01 : f32
    %26 = vector.broadcast %cst_25 : f32 to vector<16x128xf32>
    %27 = arith.mulf %26, %23 : vector<16x128xf32>
    %28 = arith.select %25, %23, %27 : vector<16x128xi1>, vector<16x128xf32>
    %c0_26 = arith.constant 0 : index
    %c0_27 = arith.constant 0 : index
    %29 = vector.load %arg5[%c0_26, %c0_27] : memref<1x128xf32, #tpu.memory_space<vmem>>, vector<1x128xf32>
    %30 = vector.broadcast %29 : vector<1x128xf32> to vector<16x128xf32>
    %31 = arith.addf %28, %30 : vector<16x128xf32>
    %c0_28 = arith.constant 0 : index
    %c0_29 = arith.constant 0 : index
    %c0_30 = arith.constant 0 : index
    %32 = vector.load %arg6[%c0_28, %c0_29, %c0_30] : memref<3x8x16xf32, #tpu.memory_space<vmem>>, vector<1x8x16xf32>
    %33 = vector.shape_cast %32 : vector<1x8x16xf32> to vector<8x16xf32>
    %cst_31 = arith.constant dense<0.000000e+00> : vector<8x128xf32>
    %34 = tpu.matmul %33, %31, %cst_31 {dimension_numbers = #tpu.dot_dimension_numbers<[1], [0], [0], [1], [0, 0, 1, 1], [], []>} : vector<8x16xf32>, vector<16x128xf32>, vector<8x128xf32> -> vector<8x128xf32>
    %c0_32 = arith.constant 0 : index
    %c0_33 = arith.constant 0 : index
    %c0_34 = arith.constant 0 : index
    %35 = vector.load %arg7[%c0_32, %c0_33, %c0_34] : memref<3x128x128xf32, #tpu.memory_space<vmem>>, vector<1x128x128xf32>
    %36 = vector.shape_cast %35 : vector<1x128x128xf32> to vector<128x128xf32>
    %cst_35 = arith.constant dense<0.000000e+00> : vector<8x128xf32>
    %37 = tpu.matmul %34, %36, %cst_35 {dimension_numbers = #tpu.dot_dimension_numbers<[1], [0], [0], [1], [0, 0, 1, 1], [], []>} : vector<8x128xf32>, vector<128x128xf32>, vector<8x128xf32> -> vector<8x128xf32>
    %c1_36 = arith.constant 1 : index
    %c0_37 = arith.constant 0 : index
    %c0_38 = arith.constant 0 : index
    %38 = vector.load %arg6[%c1_36, %c0_37, %c0_38] : memref<3x8x16xf32, #tpu.memory_space<vmem>>, vector<1x8x16xf32>
    %39 = vector.shape_cast %38 : vector<1x8x16xf32> to vector<8x16xf32>
    %cst_39 = arith.constant dense<0.000000e+00> : vector<8x128xf32>
    %40 = tpu.matmul %39, %31, %cst_39 {dimension_numbers = #tpu.dot_dimension_numbers<[1], [0], [0], [1], [0, 0, 1, 1], [], []>} : vector<8x16xf32>, vector<16x128xf32>, vector<8x128xf32> -> vector<8x128xf32>
    %c1_40 = arith.constant 1 : index
    %c0_41 = arith.constant 0 : index
    %c0_42 = arith.constant 0 : index
    %41 = vector.load %arg7[%c1_40, %c0_41, %c0_42] : memref<3x128x128xf32, #tpu.memory_space<vmem>>, vector<1x128x128xf32>
    %42 = vector.shape_cast %41 : vector<1x128x128xf32> to vector<128x128xf32>
    %cst_43 = arith.constant dense<0.000000e+00> : vector<8x128xf32>
    %43 = tpu.matmul %40, %42, %cst_43 {dimension_numbers = #tpu.dot_dimension_numbers<[1], [0], [0], [1], [0, 0, 1, 1], [], []>} : vector<8x128xf32>, vector<128x128xf32>, vector<8x128xf32> -> vector<8x128xf32>
    %44 = arith.addf %37, %43 : vector<8x128xf32>
    %c2_44 = arith.constant 2 : index
    %c0_45 = arith.constant 0 : index
    %c0_46 = arith.constant 0 : index
    %45 = vector.load %arg6[%c2_44, %c0_45, %c0_46] : memref<3x8x16xf32, #tpu.memory_space<vmem>>, vector<1x8x16xf32>
    %46 = vector.shape_cast %45 : vector<1x8x16xf32> to vector<8x16xf32>
    %cst_47 = arith.constant dense<0.000000e+00> : vector<8x128xf32>
    %47 = tpu.matmul %46, %31, %cst_47 {dimension_numbers = #tpu.dot_dimension_numbers<[1], [0], [0], [1], [0, 0, 1, 1], [], []>} : vector<8x16xf32>, vector<16x128xf32>, vector<8x128xf32> -> vector<8x128xf32>
    %c2_48 = arith.constant 2 : index
    %c0_49 = arith.constant 0 : index
    %c0_50 = arith.constant 0 : index
    %48 = vector.load %arg7[%c2_48, %c0_49, %c0_50] : memref<3x128x128xf32, #tpu.memory_space<vmem>>, vector<1x128x128xf32>
    %49 = vector.shape_cast %48 : vector<1x128x128xf32> to vector<128x128xf32>
    %cst_51 = arith.constant dense<0.000000e+00> : vector<8x128xf32>
    %50 = tpu.matmul %47, %49, %cst_51 {dimension_numbers = #tpu.dot_dimension_numbers<[1], [0], [0], [1], [0, 0, 1, 1], [], []>} : vector<8x128xf32>, vector<128x128xf32>, vector<8x128xf32> -> vector<8x128xf32>
    %51 = arith.addf %44, %50 : vector<8x128xf32>
    %c0_52 = arith.constant 0 : index
    %c0_53 = arith.constant 0 : index
    %52 = vector.load %arg8[%c0_52, %c0_53] : memref<1x128xf32, #tpu.memory_space<vmem>>, vector<1x128xf32>
    %53 = vector.broadcast %52 : vector<1x128xf32> to vector<8x128xf32>
    %54 = arith.addf %51, %53 : vector<8x128xf32>
    %cst_54 = arith.constant 0.000000e+00 : f32
    %55 = vector.broadcast %cst_54 : f32 to vector<8x128xf32>
    %56 = arith.cmpf oge, %54, %55 : vector<8x128xf32>
    %cst_55 = arith.constant 2.000000e-01 : f32
    %57 = vector.broadcast %cst_55 : f32 to vector<8x128xf32>
    %58 = arith.mulf %57, %54 : vector<8x128xf32>
    %59 = arith.select %56, %54, %58 : vector<8x128xi1>, vector<8x128xf32>
    %c0_56 = arith.constant 0 : index
    %c0_57 = arith.constant 0 : index
    %60 = vector.load %arg9[%c0_56, %c0_57] : memref<1x128xf32, #tpu.memory_space<vmem>>, vector<1x128xf32>
    %61 = vector.broadcast %60 : vector<1x128xf32> to vector<8x128xf32>
    %62 = arith.addf %59, %61 : vector<8x128xf32>
    %c0_58 = arith.constant 0 : index
    %c0_59 = arith.constant 0 : index
    %c0_60 = arith.constant 0 : index
    %63 = vector.load %arg10[%c0_58, %c0_59, %c0_60] : memref<3x4x8xf32, #tpu.memory_space<vmem>>, vector<1x4x8xf32>
    %64 = vector.shape_cast %63 : vector<1x4x8xf32> to vector<4x8xf32>
    %cst_61 = arith.constant dense<0.000000e+00> : vector<4x128xf32>
    %65 = tpu.matmul %64, %62, %cst_61 {dimension_numbers = #tpu.dot_dimension_numbers<[1], [0], [0], [1], [0, 0, 1, 1], [], []>} : vector<4x8xf32>, vector<8x128xf32>, vector<4x128xf32> -> vector<4x128xf32>
    %c0_62 = arith.constant 0 : index
    %c0_63 = arith.constant 0 : index
    %c0_64 = arith.constant 0 : index
    %66 = vector.load %arg11[%c0_62, %c0_63, %c0_64] : memref<3x128x128xf32, #tpu.memory_space<vmem>>, vector<1x128x128xf32>
    %67 = vector.shape_cast %66 : vector<1x128x128xf32> to vector<128x128xf32>
    %cst_65 = arith.constant dense<0.000000e+00> : vector<4x128xf32>
    %68 = tpu.matmul %65, %67, %cst_65 {dimension_numbers = #tpu.dot_dimension_numbers<[1], [0], [0], [1], [0, 0, 1, 1], [], []>} : vector<4x128xf32>, vector<128x128xf32>, vector<4x128xf32> -> vector<4x128xf32>
    %c1_66 = arith.constant 1 : index
    %c0_67 = arith.constant 0 : index
    %c0_68 = arith.constant 0 : index
    %69 = vector.load %arg10[%c1_66, %c0_67, %c0_68] : memref<3x4x8xf32, #tpu.memory_space<vmem>>, vector<1x4x8xf32>
    %70 = vector.shape_cast %69 : vector<1x4x8xf32> to vector<4x8xf32>
    %cst_69 = arith.constant dense<0.000000e+00> : vector<4x128xf32>
    %71 = tpu.matmul %70, %62, %cst_69 {dimension_numbers = #tpu.dot_dimension_numbers<[1], [0], [0], [1], [0, 0, 1, 1], [], []>} : vector<4x8xf32>, vector<8x128xf32>, vector<4x128xf32> -> vector<4x128xf32>
    %c1_70 = arith.constant 1 : index
    %c0_71 = arith.constant 0 : index
    %c0_72 = arith.constant 0 : index
    %72 = vector.load %arg11[%c1_70, %c0_71, %c0_72] : memref<3x128x128xf32, #tpu.memory_space<vmem>>, vector<1x128x128xf32>
    %73 = vector.shape_cast %72 : vector<1x128x128xf32> to vector<128x128xf32>
    %cst_73 = arith.constant dense<0.000000e+00> : vector<4x128xf32>
    %74 = tpu.matmul %71, %73, %cst_73 {dimension_numbers = #tpu.dot_dimension_numbers<[1], [0], [0], [1], [0, 0, 1, 1], [], []>} : vector<4x128xf32>, vector<128x128xf32>, vector<4x128xf32> -> vector<4x128xf32>
    %75 = arith.addf %68, %74 : vector<4x128xf32>
    %c2_74 = arith.constant 2 : index
    %c0_75 = arith.constant 0 : index
    %c0_76 = arith.constant 0 : index
    %76 = vector.load %arg10[%c2_74, %c0_75, %c0_76] : memref<3x4x8xf32, #tpu.memory_space<vmem>>, vector<1x4x8xf32>
    %77 = vector.shape_cast %76 : vector<1x4x8xf32> to vector<4x8xf32>
    %cst_77 = arith.constant dense<0.000000e+00> : vector<4x128xf32>
    %78 = tpu.matmul %77, %62, %cst_77 {dimension_numbers = #tpu.dot_dimension_numbers<[1], [0], [0], [1], [0, 0, 1, 1], [], []>} : vector<4x8xf32>, vector<8x128xf32>, vector<4x128xf32> -> vector<4x128xf32>
    %c2_78 = arith.constant 2 : index
    %c0_79 = arith.constant 0 : index
    %c0_80 = arith.constant 0 : index
    %79 = vector.load %arg11[%c2_78, %c0_79, %c0_80] : memref<3x128x128xf32, #tpu.memory_space<vmem>>, vector<1x128x128xf32>
    %80 = vector.shape_cast %79 : vector<1x128x128xf32> to vector<128x128xf32>
    %cst_81 = arith.constant dense<0.000000e+00> : vector<4x128xf32>
    %81 = tpu.matmul %78, %80, %cst_81 {dimension_numbers = #tpu.dot_dimension_numbers<[1], [0], [0], [1], [0, 0, 1, 1], [], []>} : vector<4x128xf32>, vector<128x128xf32>, vector<4x128xf32> -> vector<4x128xf32>
    %82 = arith.addf %75, %81 : vector<4x128xf32>
    %c0_82 = arith.constant 0 : index
    %c0_83 = arith.constant 0 : index
    %83 = vector.load %arg12[%c0_82, %c0_83] : memref<1x128xf32, #tpu.memory_space<vmem>>, vector<1x128xf32>
    %84 = vector.broadcast %83 : vector<1x128xf32> to vector<4x128xf32>
    %85 = arith.addf %82, %84 : vector<4x128xf32>
    %cst_84 = arith.constant 0.000000e+00 : f32
    %86 = vector.broadcast %cst_84 : f32 to vector<4x128xf32>
    %87 = arith.cmpf oge, %85, %86 : vector<4x128xf32>
    %cst_85 = arith.constant 2.000000e-01 : f32
    %88 = vector.broadcast %cst_85 : f32 to vector<4x128xf32>
    %89 = arith.mulf %88, %85 : vector<4x128xf32>
    %90 = arith.select %87, %85, %89 : vector<4x128xi1>, vector<4x128xf32>
    %c0_86 = arith.constant 0 : index
    %c0_87 = arith.constant 0 : index
    %91 = vector.load %arg13[%c0_86, %c0_87] : memref<1x128xf32, #tpu.memory_space<vmem>>, vector<1x128xf32>
    %92 = vector.broadcast %91 : vector<1x128xf32> to vector<4x128xf32>
    %93 = arith.addf %90, %92 : vector<4x128xf32>
    %c0_88 = arith.constant 0 : index
    %c0_89 = arith.constant 0 : index
    %c0_90 = arith.constant 0 : index
    %94 = vector.load %arg14[%c0_88, %c0_89, %c0_90] : memref<3x2x4xf32, #tpu.memory_space<vmem>>, vector<1x2x4xf32>
    %95 = vector.shape_cast %94 : vector<1x2x4xf32> to vector<2x4xf32>
    %cst_91 = arith.constant dense<0.000000e+00> : vector<2x128xf32>
    %96 = tpu.matmul %95, %93, %cst_91 {dimension_numbers = #tpu.dot_dimension_numbers<[1], [0], [0], [1], [0, 0, 1, 1], [], []>} : vector<2x4xf32>, vector<4x128xf32>, vector<2x128xf32> -> vector<2x128xf32>
    %c0_92 = arith.constant 0 : index
    %c0_93 = arith.constant 0 : index
    %c0_94 = arith.constant 0 : index
    %97 = vector.load %arg15[%c0_92, %c0_93, %c0_94] : memref<3x128x128xf32, #tpu.memory_space<vmem>>, vector<1x128x128xf32>
    %98 = vector.shape_cast %97 : vector<1x128x128xf32> to vector<128x128xf32>
    %cst_95 = arith.constant dense<0.000000e+00> : vector<2x128xf32>
    %99 = tpu.matmul %96, %98, %cst_95 {dimension_numbers = #tpu.dot_dimension_numbers<[1], [0], [0], [1], [0, 0, 1, 1], [], []>} : vector<2x128xf32>, vector<128x128xf32>, vector<2x128xf32> -> vector<2x128xf32>
    %c1_96 = arith.constant 1 : index
    %c0_97 = arith.constant 0 : index
    %c0_98 = arith.constant 0 : index
    %100 = vector.load %arg14[%c1_96, %c0_97, %c0_98] : memref<3x2x4xf32, #tpu.memory_space<vmem>>, vector<1x2x4xf32>
    %101 = vector.shape_cast %100 : vector<1x2x4xf32> to vector<2x4xf32>
    %cst_99 = arith.constant dense<0.000000e+00> : vector<2x128xf32>
    %102 = tpu.matmul %101, %93, %cst_99 {dimension_numbers = #tpu.dot_dimension_numbers<[1], [0], [0], [1], [0, 0, 1, 1], [], []>} : vector<2x4xf32>, vector<4x128xf32>, vector<2x128xf32> -> vector<2x128xf32>
    %c1_100 = arith.constant 1 : index
    %c0_101 = arith.constant 0 : index
    %c0_102 = arith.constant 0 : index
    %103 = vector.load %arg15[%c1_100, %c0_101, %c0_102] : memref<3x128x128xf32, #tpu.memory_space<vmem>>, vector<1x128x128xf32>
    %104 = vector.shape_cast %103 : vector<1x128x128xf32> to vector<128x128xf32>
    %cst_103 = arith.constant dense<0.000000e+00> : vector<2x128xf32>
    %105 = tpu.matmul %102, %104, %cst_103 {dimension_numbers = #tpu.dot_dimension_numbers<[1], [0], [0], [1], [0, 0, 1, 1], [], []>} : vector<2x128xf32>, vector<128x128xf32>, vector<2x128xf32> -> vector<2x128xf32>
    %106 = arith.addf %99, %105 : vector<2x128xf32>
    %c2_104 = arith.constant 2 : index
    %c0_105 = arith.constant 0 : index
    %c0_106 = arith.constant 0 : index
    %107 = vector.load %arg14[%c2_104, %c0_105, %c0_106] : memref<3x2x4xf32, #tpu.memory_space<vmem>>, vector<1x2x4xf32>
    %108 = vector.shape_cast %107 : vector<1x2x4xf32> to vector<2x4xf32>
    %cst_107 = arith.constant dense<0.000000e+00> : vector<2x128xf32>
    %109 = tpu.matmul %108, %93, %cst_107 {dimension_numbers = #tpu.dot_dimension_numbers<[1], [0], [0], [1], [0, 0, 1, 1], [], []>} : vector<2x4xf32>, vector<4x128xf32>, vector<2x128xf32> -> vector<2x128xf32>
    %c2_108 = arith.constant 2 : index
    %c0_109 = arith.constant 0 : index
    %c0_110 = arith.constant 0 : index
    %110 = vector.load %arg15[%c2_108, %c0_109, %c0_110] : memref<3x128x128xf32, #tpu.memory_space<vmem>>, vector<1x128x128xf32>
    %111 = vector.shape_cast %110 : vector<1x128x128xf32> to vector<128x128xf32>
    %cst_111 = arith.constant dense<0.000000e+00> : vector<2x128xf32>
    %112 = tpu.matmul %109, %111, %cst_111 {dimension_numbers = #tpu.dot_dimension_numbers<[1], [0], [0], [1], [0, 0, 1, 1], [], []>} : vector<2x128xf32>, vector<128x128xf32>, vector<2x128xf32> -> vector<2x128xf32>
    %113 = arith.addf %106, %112 : vector<2x128xf32>
    %c0_112 = arith.constant 0 : index
    %c0_113 = arith.constant 0 : index
    %114 = vector.load %arg16[%c0_112, %c0_113] : memref<1x128xf32, #tpu.memory_space<vmem>>, vector<1x128xf32>
    %115 = vector.broadcast %114 : vector<1x128xf32> to vector<2x128xf32>
    %116 = arith.addf %113, %115 : vector<2x128xf32>
    %cst_114 = arith.constant 0.000000e+00 : f32
    %117 = vector.broadcast %cst_114 : f32 to vector<2x128xf32>
    %118 = arith.cmpf oge, %116, %117 : vector<2x128xf32>
    %cst_115 = arith.constant 2.000000e-01 : f32
    %119 = vector.broadcast %cst_115 : f32 to vector<2x128xf32>
    %120 = arith.mulf %119, %116 : vector<2x128xf32>
    %121 = arith.select %118, %116, %120 : vector<2x128xi1>, vector<2x128xf32>
    %c0_116 = arith.constant 0 : index
    %c0_117 = arith.constant 0 : index
    %122 = vector.load %arg17[%c0_116, %c0_117] : memref<1x128xf32, #tpu.memory_space<vmem>>, vector<1x128xf32>
    %123 = vector.broadcast %122 : vector<1x128xf32> to vector<2x128xf32>
    %124 = arith.addf %121, %123 : vector<2x128xf32>
    %c0_118 = arith.constant 0 : index
    %c0_119 = arith.constant 0 : index
    %c0_120 = arith.constant 0 : index
    %125 = vector.load %arg18[%c0_118, %c0_119, %c0_120] : memref<1x2x2xf32, #tpu.memory_space<vmem>>, vector<1x2x2xf32>
    %126 = vector.shape_cast %125 : vector<1x2x2xf32> to vector<2x2xf32>
    %cst_121 = arith.constant dense<0.000000e+00> : vector<2x128xf32>
    %127 = tpu.matmul %126, %124, %cst_121 {dimension_numbers = #tpu.dot_dimension_numbers<[1], [0], [0], [1], [0, 0, 1, 1], [], []>} : vector<2x2xf32>, vector<2x128xf32>, vector<2x128xf32> -> vector<2x128xf32>
    %c0_122 = arith.constant 0 : index
    %c0_123 = arith.constant 0 : index
    %c0_124 = arith.constant 0 : index
    %128 = vector.load %arg19[%c0_122, %c0_123, %c0_124] : memref<1x1x128xf32, #tpu.memory_space<vmem>>, vector<1x1x128xf32>
    %129 = vector.shape_cast %128 : vector<1x1x128xf32> to vector<1x128xf32>
    %130 = vector.broadcast %129 : vector<1x128xf32> to vector<2x128xf32>
    %131 = arith.mulf %127, %130 : vector<2x128xf32>
    %cst_125 = arith.constant dense<0.000000e+00> : vector<2xf32>
    %132 = vector.multi_reduction <add>, %131, %cst_125 [1] : vector<2x128xf32> to vector<2xf32>
    %133 = vector.shape_cast %132 : vector<2xf32> to vector<2x1xf32>
    %c0_126 = arith.constant 0 : index
    %c0_127 = arith.constant 0 : index
    %134 = vector.load %arg20[%c0_126, %c0_127] : memref<1x1xf32, #tpu.memory_space<vmem>>, vector<1x1xf32>
    %135 = vector.broadcast %134 : vector<1x1xf32> to vector<2x1xf32>
    %136 = arith.addf %133, %135 : vector<2x1xf32>
    %cst_128 = arith.constant 0.000000e+00 : f32
    %137 = vector.broadcast %cst_128 : f32 to vector<2x1xf32>
    %138 = arith.subf %137, %136 : vector<2x1xf32>
    %139 = math.exp %138 : vector<2x1xf32>
    %cst_129 = arith.constant 1.000000e+00 : f32
    %140 = vector.broadcast %cst_129 : f32 to vector<2x1xf32>
    %141 = arith.addf %140, %139 : vector<2x1xf32>
    %cst_130 = arith.constant 1.000000e+00 : f32
    %142 = vector.broadcast %cst_130 : f32 to vector<2x1xf32>
    %143 = arith.divf %142, %141 : vector<2x1xf32>
    %c0_131 = arith.constant 0 : index
    %c0_132 = arith.constant 0 : index
    %144 = vector.load %arg21[%c0_131, %c0_132] : memref<2x1xf32, #tpu.memory_space<vmem>>, vector<2x1xf32>
    tpu.vector_store %arg21[%c0_131, %c0_132], %143 {strides = array<i32>} : memref<2x1xf32, #tpu.memory_space<vmem>>, vector<2x1xf32>,
    return
  }
  func.func @transform_0(%arg0: i32) -> (i32, i32) {
    %c0_i32 = arith.constant 0 : i32
    %c0_i32_0 = arith.constant 0 : i32
    %c0_i32_1 = arith.constant 0 : i32
    return %c0_i32, %c0_i32_0 : i32, i32
  }
  func.func @transform_1(%arg0: i32) -> (i32, i32, i32) {
    %c0_i32 = arith.constant 0 : i32
    %c0_i32_0 = arith.constant 0 : i32
    %c0_i32_1 = arith.constant 0 : i32
    %c0_i32_2 = arith.constant 0 : i32
    return %c0_i32, %c0_i32_0, %c0_i32_1 : i32, i32, i32
  }
  func.func @transform_2(%arg0: i32) -> (i32, i32, i32) {
    %c0_i32 = arith.constant 0 : i32
    %c0_i32_0 = arith.constant 0 : i32
    %c0_i32_1 = arith.constant 0 : i32
    %c0_i32_2 = arith.constant 0 : i32
    return %c0_i32, %c0_i32_0, %c0_i32_1 : i32, i32, i32
  }
  func.func @transform_3(%arg0: i32) -> (i32, i32) {
    %c0_i32 = arith.constant 0 : i32
    %c0_i32_0 = arith.constant 0 : i32
    %c0_i32_1 = arith.constant 0 : i32
    return %c0_i32, %c0_i32_0 : i32, i32
  }
  func.func @transform_4(%arg0: i32) -> (i32, i32) {
    %c0_i32 = arith.constant 0 : i32
    %c0_i32_0 = arith.constant 0 : i32
    %c0_i32_1 = arith.constant 0 : i32
    return %c0_i32, %c0_i32_0 : i32, i32
  }
  func.func @transform_5(%arg0: i32) -> (i32, i32, i32) {
    %c0_i32 = arith.constant 0 : i32
    %c0_i32_0 = arith.constant 0 : i32
    %c0_i32_1 = arith.constant 0 : i32
    %c0_i32_2 = arith.constant 0 : i32
    return %c0_i32, %c0_i32_0, %c0_i32_1 : i32, i32, i32
  }
  func.func @transform_6(%arg0: i32) -> (i32, i32, i32) {
    %c0_i32 = arith.constant 0 : i32
    %c0_i32_0 = arith.constant 0 : i32
    %c0_i32_1 = arith.constant 0 : i32
    %c0_i32_2 = arith.constant 0 : i32
    return %c0_i32, %c0_i32_0, %c0_i32_1 : i32, i32, i32
  }
  func.func @transform_7(%arg0: i32) -> (i32, i32) {
    %c0_i32 = arith.constant 0 : i32
    %c0_i32_0 = arith.constant 0 : i32
    %c0_i32_1 = arith.constant 0 : i32
    return %c0_i32, %c0_i32_0 : i32, i32
  }
  func.func @transform_8(%arg0: i32) -> (i32, i32) {
    %c0_i32 = arith.constant 0 : i32
    %c0_i32_0 = arith.constant 0 : i32
    %c0_i32_1 = arith.constant 0 : i32
    return %c0_i32, %c0_i32_0 : i32, i32
  }
  func.func @transform_9(%arg0: i32) -> (i32, i32, i32) {
    %c0_i32 = arith.constant 0 : i32
    %c0_i32_0 = arith.constant 0 : i32
    %c0_i32_1 = arith.constant 0 : i32
    %c0_i32_2 = arith.constant 0 : i32
    return %c0_i32, %c0_i32_0, %c0_i32_1 : i32, i32, i32
  }
  func.func @transform_10(%arg0: i32) -> (i32, i32, i32) {
    %c0_i32 = arith.constant 0 : i32
    %c0_i32_0 = arith.constant 0 : i32
    %c0_i32_1 = arith.constant 0 : i32
    %c0_i32_2 = arith.constant 0 : i32
    return %c0_i32, %c0_i32_0, %c0_i32_1 : i32, i32, i32
  }
  func.func @transform_11(%arg0: i32) -> (i32, i32) {
    %c0_i32 = arith.constant 0 : i32
    %c0_i32_0 = arith.constant 0 : i32
    %c0_i32_1 = arith.constant 0 : i32
    return %c0_i32, %c0_i32_0 : i32, i32
  }
  func.func @transform_12(%arg0: i32) -> (i32, i32) {
    %c0_i32 = arith.constant 0 : i32
    %c0_i32_0 = arith.constant 0 : i32
    %c0_i32_1 = arith.constant 0 : i32
    return %c0_i32, %c0_i32_0 : i32, i32
  }
  func.func @transform_13(%arg0: i32) -> (i32, i32, i32) {
    %c0_i32 = arith.constant 0 : i32
    %c0_i32_0 = arith.constant 0 : i32
    %c0_i32_1 = arith.constant 0 : i32
    %c0_i32_2 = arith.constant 0 : i32
    return %c0_i32, %c0_i32_0, %c0_i32_1 : i32, i32, i32
  }
  func.func @transform_14(%arg0: i32) -> (i32, i32, i32) {
    %c0_i32 = arith.constant 0 : i32
    %c0_i32_0 = arith.constant 0 : i32
    %c0_i32_1 = arith.constant 0 : i32
    %c0_i32_2 = arith.constant 0 : i32
    return %c0_i32, %c0_i32_0, %c0_i32_1 : i32, i32, i32
  }
  func.func @transform_15(%arg0: i32) -> (i32, i32) {
    %c0_i32 = arith.constant 0 : i32
    %c0_i32_0 = arith.constant 0 : i32
    %c0_i32_1 = arith.constant 0 : i32
    return %c0_i32, %c0_i32_0 : i32, i32
  }
  func.func @transform_16(%arg0: i32) -> (i32, i32) {
    %c0_i32 = arith.constant 0 : i32
    %c0_i32_0 = arith.constant 0 : i32
    %c0_i32_1 = arith.constant 0 : i32
    return %c0_i32, %c0_i32_0 : i32, i32
  }
  func.func @transform_17(%arg0: i32) -> (i32, i32, i32) {
    %c0_i32 = arith.constant 0 : i32
    %c0_i32_0 = arith.constant 0 : i32
    %c0_i32_1 = arith.constant 0 : i32
    %c0_i32_2 = arith.constant 0 : i32
    return %c0_i32, %c0_i32_0, %c0_i32_1 : i32, i32, i32
  }
  func.func @transform_18(%arg0: i32) -> (i32, i32, i32) {
    %c0_i32 = arith.constant 0 : i32
    %c0_i32_0 = arith.constant 0 : i32
    %c0_i32_1 = arith.constant 0 : i32
    %c0_i32_2 = arith.constant 0 : i32
    return %c0_i32, %c0_i32_0, %c0_i32_1 : i32, i32, i32
  }
  func.func @transform_19(%arg0: i32) -> (i32, i32) {
    %c0_i32 = arith.constant 0 : i32
    %c0_i32_0 = arith.constant 0 : i32
    %c0_i32_1 = arith.constant 0 : i32
    return %c0_i32, %c0_i32_0 : i32, i32
  }
  func.func @transform_20(%arg0: i32) -> (i32, i32) {
    %c0_i32 = arith.constant 0 : i32
    %c0_i32_0 = arith.constant 0 : i32
    %c0_i32_1 = arith.constant 0 : i32
    return %c0_i32, %c0_i32_0 : i32, i32
  }
}

</mosaic_0001>

<bundles_post_ra>
// kernel: discriminator_forward.1
= control target key start
LH: loop header
LB: loop body
LE: loop exit
PB: predicated region body
PF: predicated region fallthrough
CT: control target
= control target key end

     0   :  { %s4564_s0 = inlined_call_operand.vmem [shape: f32[32,64], index: 0, kind: input, shape index: {}]   ;;  %s4565_s1 = inlined_call_operand.hbm [shape: f32[3,16,32], index: 1, kind: input, shape index: {}]   ;;  %s4566_s2 = inlined_call_operand.vmem [shape: f32[3,64,128], index: 2, kind: input, shape index: {}]   ;;  %s4567_s3 = inlined_call_operand.vmem [shape: f32[1,128], index: 3, kind: input, shape index: {}]   ;;  %s4568_s4 = inlined_call_operand.hbm [shape: f32[1,128], index: 4, kind: input, shape index: {}]   ;;  %s4569_s5 = inlined_call_operand.vmem [shape: f32[3,8,16], index: 5, kind: input, shape index: {}]   ;;  %s4570_s6 = inlined_call_operand.vmem [shape: f32[3,128,128], index: 6, kind: input, shape index: {}]   ;;  %s4571_s7 = inlined_call_operand.hbm [shape: f32[1,128], index: 7, kind: input, shape index: {}]   ;;  %s4572_s8 = inlined_call_operand.hbm [shape: f32[1,128], index: 8, kind: input, shape index: {}]   ;;  %s4573_s9 = inlined_call_operand.hbm [shape: f32[3,4,8], index: 9, kind: input, shape index: {}]   ;;  %s4574_s10 = inlined_call_operand.hbm [shape: f32[3,128,128], index: 10, kind: input, shape index: {}]   ;;  %s4575_s11 = inlined_call_operand.hbm [shape: f32[1,128], index: 11, kind: input, shape index: {}]   ;;  %s4576_s12 = inlined_call_operand.hbm [shape: f32[1,128], index: 12, kind: input, shape index: {}]   ;;  %s4577_s13 = inlined_call_operand.hbm [shape: f32[3,2,4], index: 13, kind: input, shape index: {}]   ;;  %s4578_s14 = inlined_call_operand.hbm [shape: f32[3,128,128], index: 14, kind: input, shape index: {}]   ;;  %s4579_s15 = inlined_call_operand.hbm [shape: f32[1,128], index: 15, kind: input, shape index: {}]   ;;  %s4580_s16 = inlined_call_operand.hbm [shape: f32[1,128], index: 16, kind: input, shape index: {}]   ;;  %s4581_s17 = inlined_call_operand.hbm [shape: f32[1,2,2], index: 17, kind: input, shape index: {}]   ;;  %s4582_s18 = inlined_call_operand.hbm [shape: f32[1,1,128], index: 18, kind: input, shape index: {}]   ;;  %s4583_s19 = inlined_call_operand.<no memory space> [shape: f32[1,1], index: 19, kind: input, shape index: {}]   ;;  %s4584_s20 = inlined_call_operand.vmem [shape: f32[2,1], index: 20, kind: output, shape index: {}]  }
   0x1   :  { %4589 = sst [smem:[#allocation33_spill]] %s4564_s0  ;;  %v25_v0 = vstv %s4583_s19 }
   0x2   :  { %4590 = sst [smem:[#allocation34_spill]] %s4565_s1  ;;  %26 = vst [vmem:[#allocation2] sm:$0x1] %v25_v0 }
   0x3   :  { %4591 = sst [smem:[#allocation35_spill]] %s4566_s2 }
   0x4   :  { %4592 = sst [smem:[#allocation36_spill]] %s4567_s3 }
   0x5   :  { %4593 = sst [smem:[#allocation37_spill]] %s4568_s4 }
   0x6   :  { %27 = vsyncpa [#allocation4], 0 }
   0x7   :  { %28 = vsyncpa [#allocation6], 0 }
   0x8   :  { %29 = vsyncpa [#allocation9], 0 }
   0x9   :  { %30 = vsyncpa [#allocation12], 0 }
   0xa   :  { %31 = vsyncpa [#allocation15], 0 }
   0xb   :  { %32 = vsyncpa [#allocation18], 0 }
   0xc   :  { %33 = vsyncpa [#allocation21], 0 }
   0xd   :  { %34 = vsyncpa [#allocation24], 0  ;;  %s3851_s23 = smov [#allocation5]   ;;  %s3852_s2 = smov [#allocation8]  }
   0xe   :  { %s59_s24 = sshll.u32 %s3851_s23, 4  ;;  %s83_s25 = sshll.u32 %s3852_s2, 4  ;;  %s60_s24 = int_to_ptr.vmem [resolvable:$true] %s59_s24  ;;  %s84_s25 = int_to_ptr.vmem [resolvable:$true] %s83_s25 }
   0xf   :  { %s4594_s27 = sld [smem:[#allocation37_spill]] }
  0x15   :  { %s3527_s28 = scalar_lea.hbm %s4594_s27, 16 }
  0x16   :  { %p3528_p0 = scmp.ne.s32.totalorder %s4594_s27, %s3527_s28  ;;  %p3531_p1 = scmp.lt.u32.totalorder %s3527_s28, %s4594_s27 }
  0x18   :  { %p3533_p2 = pnand %p3531_p1, %p3528_p0 }
  0x1a   :  { %3536 = shalt.err (!%p3533_p2)
}
  0x1b   :  { %s3537_s0 = scalar_lea.vmem %s60_s24, 16  ;;  %s3541_s21 = scalar_lea.vmem %s60_s24, 32 }
  0x1c   :  { %p3538_p3 = scmp.ne.s32.totalorder %s60_s24, %s3537_s0  ;;  %p3542_p4 = scmp.lt.s32.totalorder %s60_s24, %s60_s24 }
  0x1d   :  { %p3543_p5 = scmp.lt.s32.totalorder %s3541_s21, %s3537_s0 }
  0x1f   :  { %p3544_p6 = por %p3543_p5, %p3542_p4 }
  0x21   :  { %p3545_p7 = pnand %p3544_p6, %p3538_p3 }
  0x23   :  { %3548 = shalt.err (!%p3545_p7)
}
  0x24   :  { %62 = dma.hbm_to_vmem [thread:$0]  %s4594_s27, 16, %s60_s24, [#allocation6]  }
  0x25   :  { %s3549_s3 = scalar_lea.hbm %s4572_s8, 16 }
  0x26   :  { %p3550_p8 = scmp.ne.s32.totalorder %s4572_s8, %s3549_s3  ;;  %p3553_p9 = scmp.lt.u32.totalorder %s3549_s3, %s4572_s8 }
  0x28   :  { %p3555_p10 = pnand %p3553_p9, %p3550_p8 }
  0x2a   :  { %3558 = shalt.err (!%p3555_p10)
}
  0x2b   :  { %s3559_s29 = scalar_lea.vmem %s84_s25, 16  ;;  %s3563_s30 = scalar_lea.vmem %s84_s25, 32 }
  0x2c   :  { %p3560_p11 = scmp.ne.s32.totalorder %s84_s25, %s3559_s29  ;;  %p3564_p12 = scmp.lt.s32.totalorder %s84_s25, %s84_s25 }
  0x2d   :  { %p3565_p13 = scmp.lt.s32.totalorder %s3563_s30, %s3559_s29 }
  0x2f   :  { %p3566_p0 = por %p3565_p13, %p3564_p12 }
  0x31   :  { %p3567_p1 = pnand %p3566_p0, %p3560_p11 }
  0x33   :  { %3570 = shalt.err (!%p3567_p1)
}
  0x34   :  { %86 = dma.hbm_to_vmem [thread:$0]  %s4572_s8, 16, %s84_s25, [#allocation9]  }
  0x35   :  { %s3853_s0 = smov [#allocation11]   ;;  %s3854_s1 = smov [#allocation14]  }
  0x36   :  { %s104_s21 = sshll.u32 %s3853_s0, 4  ;;  %s127_s22 = sshll.u32 %s3854_s1, 4  ;;  %s105_s21 = int_to_ptr.vmem [resolvable:$true] %s104_s21  ;;  %s4006_s22 = int_to_ptr.vmem [resolvable:$true] %s127_s22 }
  0x37   :  { %s3571_s3 = scalar_lea.hbm %s4574_s10, 6144 }
  0x38   :  { %p3572_p2 = scmp.ne.s32.totalorder %s4574_s10, %s3571_s3  ;;  %p3575_p3 = scmp.lt.u32.totalorder %s3571_s3, %s4574_s10 }
  0x3a   :  { %p3577_p4 = pnand %p3575_p3, %p3572_p2 }
  0x3c   :  { %3580 = shalt.err (!%p3577_p4)
}
  0x3d   :  { %s3581_s8 = scalar_lea.vmem %s105_s21, 6144  ;;  %p3586_p6 = scmp.lt.s32.totalorder %s105_s21, %s105_s21 }
  0x3e   :  { %p3582_p5 = scmp.ne.s32.totalorder %s105_s21, %s3581_s8  ;;  %p3587_p7 = scmp.lt.s32.totalorder %s3581_s8, %s3581_s8 }
  0x40   :  { %p3588_p8 = por %p3587_p7, %p3586_p6 }
  0x42   :  { %p3589_p9 = pnand %p3588_p8, %p3582_p5 }
  0x44   :  { %3592 = shalt.err (!%p3589_p9)
}
  0x45   :  { %s3855_s25 = smov 128   ;;  %s3856_s29 = smov 8  }
  0x46   :  { %110 = dma.hbm_to_vmem [thread:$0]  %s4574_s10, 6144, %s105_s21, [#allocation12], %s3855_s25, %s3855_s25, %s3856_s29  }
  0x47   :  { %s3593_s1 = scalar_lea.hbm %s4576_s12, 16 }
  0x48   :  { %p3594_p10 = scmp.ne.s32.totalorder %s4576_s12, %s3593_s1  ;;  %p3597_p11 = scmp.lt.u32.totalorder %s3593_s1, %s4576_s12 }
  0x4a   :  { %p3599_p12 = pnand %p3597_p11, %p3594_p10 }
  0x4c   :  { %3602 = shalt.err (!%p3599_p12)
}
  0x4d   :  { %s3603_s28 = scalar_lea.vmem %s4006_s22, 16  ;;  %s3607_s10 = scalar_lea.vmem %s4006_s22, 32 }
  0x4e   :  { %p3604_p13 = scmp.ne.s32.totalorder %s4006_s22, %s3603_s28  ;;  %p3608_p0 = scmp.lt.s32.totalorder %s4006_s22, %s4006_s22 }
  0x4f   :  { %p3609_p1 = scmp.lt.s32.totalorder %s3607_s10, %s3603_s28 }
  0x51   :  { %p3610_p2 = por %p3609_p1, %p3608_p0 }
  0x53   :  { %p3611_p3 = pnand %p3610_p2, %p3604_p13 }
  0x55   :  { %3614 = shalt.err (!%p3611_p3)
}
  0x56   :  { %130 = dma.hbm_to_vmem [thread:$0]  %s4576_s12, 16, %s4006_s22, [#allocation15]  }
  0x57   :  { %s3857_s4 = smov [#allocation17]   ;;  %s3858_s30 = smov [#allocation20]  }
  0x58   :  { %s148_s8 = sshll.u32 %s3857_s4, 4  ;;  %s171_s24 = sshll.u32 %s3858_s30, 4  ;;  %s149_s8 = int_to_ptr.vmem [resolvable:$true] %s148_s8  ;;  %s172_s24 = int_to_ptr.vmem [resolvable:$true] %s171_s24 }
  0x59   :  { %s3615_s1 = scalar_lea.hbm %s4578_s14, 6144 }
  0x5a   :  { %p3616_p4 = scmp.ne.s32.totalorder %s4578_s14, %s3615_s1  ;;  %p3619_p5 = scmp.lt.u32.totalorder %s3615_s1, %s4578_s14 }
  0x5c   :  { %p3621_p6 = pnand %p3619_p5, %p3616_p4 }
  0x5e   :  { %3624 = shalt.err (!%p3621_p6)
}
  0x5f   :  { %s3625_s12 = scalar_lea.vmem %s149_s8, 6144  ;;  %p3630_p8 = scmp.lt.s32.totalorder %s149_s8, %s149_s8 }
  0x60   :  { %p3626_p7 = scmp.ne.s32.totalorder %s149_s8, %s3625_s12  ;;  %p3631_p9 = scmp.lt.s32.totalorder %s3625_s12, %s3625_s12 }
  0x62   :  { %p3632_p10 = por %p3631_p9, %p3630_p8 }
  0x64   :  { %p3633_p11 = pnand %p3632_p10, %p3626_p7 }
  0x66   :  { %3636 = shalt.err (!%p3633_p11)
}
  0x67   :  { %154 = dma.hbm_to_vmem [thread:$0]  %s4578_s14, 6144, %s149_s8, [#allocation18], %s3855_s25, %s3855_s25, %s3856_s29  }
  0x68   :  { %s3637_s19 = scalar_lea.hbm %s4580_s16, 16 }
  0x69   :  { %p3638_p12 = scmp.ne.s32.totalorder %s4580_s16, %s3637_s19  ;;  %p3641_p13 = scmp.lt.u32.totalorder %s3637_s19, %s4580_s16 }
  0x6b   :  { %p3643_p0 = pnand %p3641_p13, %p3638_p12 }
  0x6d   :  { %3646 = shalt.err (!%p3643_p0)
}
  0x6e   :  { %s3647_s1 = scalar_lea.vmem %s172_s24, 16  ;;  %s3651_s23 = scalar_lea.vmem %s172_s24, 32 }
  0x6f   :  { %p3648_p1 = scmp.ne.s32.totalorder %s172_s24, %s3647_s1  ;;  %p3652_p2 = scmp.lt.s32.totalorder %s172_s24, %s172_s24 }
  0x70   :  { %p3653_p3 = scmp.lt.s32.totalorder %s3651_s23, %s3647_s1 }
  0x72   :  { %p3654_p4 = por %p3653_p3, %p3652_p2 }
  0x74   :  { %p3655_p5 = pnand %p3654_p4, %p3648_p1 }
  0x76   :  { %3658 = shalt.err (!%p3655_p5)
}
  0x77   :  { %174 = dma.hbm_to_vmem [thread:$0]  %s4580_s16, 16, %s172_s24, [#allocation21]  }
  0x78   :  { %s3859_s2 = smov [#allocation3]   ;;  %s3860_s26 = smov [#allocation7]  }
  0x79   :  { %s42_s3 = sshll.u32 %s3859_s2, 4  ;;  %s73_s12 = sshll.u32 %s3860_s26, 4  ;;  %s43_s3 = int_to_ptr.vmem [resolvable:$true] %s42_s3  ;;  %s74_s12 = int_to_ptr.vmem [resolvable:$true] %s73_s12 }
  0x7a   :  { %s4595_s10 = sld [smem:[#allocation34_spill]] }
  0x80   :  { %s3659_s21 = scalar_lea.hbm %s4595_s10, 768 }
  0x81   :  { %p3660_p6 = scmp.ne.s32.totalorder %s4595_s10, %s3659_s21  ;;  %p3663_p7 = scmp.lt.u32.totalorder %s3659_s21, %s4595_s10 }
  0x83   :  { %p3665_p8 = pnand %p3663_p7, %p3660_p6 }
  0x85   :  { %3668 = shalt.err (!%p3665_p8)
}
  0x86   :  { %s3669_s16 = scalar_lea.vmem %s43_s3, 768  ;;  %p3674_p10 = scmp.lt.s32.totalorder %s43_s3, %s43_s3 }
  0x87   :  { %p3670_p9 = scmp.ne.s32.totalorder %s43_s3, %s3669_s16  ;;  %p3675_p11 = scmp.lt.s32.totalorder %s3669_s16, %s3669_s16 }
  0x89   :  { %p3676_p12 = por %p3675_p11, %p3674_p10 }
  0x8b   :  { %p3677_p13 = pnand %p3676_p12, %p3670_p9 }
  0x8d   :  { %3680 = shalt.err (!%p3677_p13)
}
  0x8e   :  { %48 = dma.hbm_to_vmem [thread:$0]  %s4595_s10, 768, %s43_s3, [#allocation4], %s3855_s25, %s3855_s25, %s3856_s29  }
  0x8f   :  { %s3681_s14 = scalar_lea.hbm %s4571_s7, 16 }
  0x90   :  { %p3682_p0 = scmp.ne.s32.totalorder %s4571_s7, %s3681_s14  ;;  %p3685_p1 = scmp.lt.u32.totalorder %s3681_s14, %s4571_s7 }
  0x92   :  { %p3687_p2 = pnand %p3685_p1, %p3682_p0 }
  0x94   :  { %3690 = shalt.err (!%p3687_p2)
}
  0x95   :  { %s3691_s28 = scalar_lea.vmem %s74_s12, 16  ;;  %s3695_s21 = scalar_lea.vmem %s74_s12, 32 }
  0x96   :  { %p3692_p3 = scmp.ne.s32.totalorder %s74_s12, %s3691_s28  ;;  %p3696_p4 = scmp.lt.s32.totalorder %s74_s12, %s74_s12 }
  0x97   :  { %p3697_p5 = scmp.lt.s32.totalorder %s3695_s21, %s3691_s28 }
  0x99   :  { %p3698_p6 = por %p3697_p5, %p3696_p4 }
  0x9b   :  { %p3699_p7 = pnand %p3698_p6, %p3692_p3 }
  0x9d   :  { %3702 = shalt.err (!%p3699_p7)
}
  0x9e   :  { %76 = dma.hbm_to_vmem [thread:$0]  %s4571_s7, 16, %s74_s12, [#allocation6]  }
  0x9f   :  { %s3861_s3 = smov [#allocation10]   ;;  %s3703_s30 = scalar_lea.hbm %s4573_s9, 192 }
  0xa0   :  { %s92_s10 = sshll.u32 %s3861_s3, 4  ;;  %p3704_p8 = scmp.ne.s32.totalorder %s4573_s9, %s3703_s30  ;;  %s93_s10 = int_to_ptr.vmem [resolvable:$true] %s92_s10 }
  0xa1   :  { %p3707_p9 = scmp.lt.u32.totalorder %s3703_s30, %s4573_s9 }
  0xa3   :  { %p3709_p10 = pnand %p3707_p9, %p3704_p8 }
  0xa5   :  { %3712 = shalt.err (!%p3709_p10)
}
  0xa6   :  { %s3713_s1 = scalar_lea.vmem %s93_s10, 192  ;;  %p3718_p12 = scmp.lt.s32.totalorder %s93_s10, %s93_s10 }
  0xa7   :  { %p3714_p11 = scmp.ne.s32.totalorder %s93_s10, %s3713_s1  ;;  %p3719_p13 = scmp.lt.s32.totalorder %s3713_s1, %s3713_s1 }
  0xa9   :  { %p3720_p0 = por %p3719_p13, %p3718_p12 }
  0xab   :  { %p3721_p1 = pnand %p3720_p0, %p3714_p11 }
  0xad   :  { %3724 = shalt.err (!%p3721_p1)
}
  0xae   :  { %s3862_s7 = smov 64   ;;  %s3863_s12 = smov 4  }
  0xaf   :  { %98 = dma.hbm_to_vmem [thread:$0]  %s4573_s9, 192, %s93_s10, [#allocation9], %s3862_s7, %s3862_s7, %s3863_s12  }
  0xb0   :  { %s3864_s8 = smov [#allocation13]   ;;  %s3865_s26 = smov [#allocation16]  }
  0xb1   :  { %s117_s2 = sshll.u32 %s3864_s8, 4  ;;  %s136_s22 = sshll.u32 %s3865_s26, 4  ;;  %s118_s2 = int_to_ptr.vmem [resolvable:$true] %s117_s2  ;;  %s137_s22 = int_to_ptr.vmem [resolvable:$true] %s136_s22 }
  0xb2   :  { %s3725_s25 = scalar_lea.hbm %s4575_s11, 16 }
  0xb3   :  { %p3726_p2 = scmp.ne.s32.totalorder %s4575_s11, %s3725_s25  ;;  %p3729_p3 = scmp.lt.u32.totalorder %s3725_s25, %s4575_s11 }
  0xb5   :  { %p3731_p4 = pnand %p3729_p3, %p3726_p2 }
  0xb7   :  { %3734 = shalt.err (!%p3731_p4)
}
  0xb8   :  { %s3735_s9 = scalar_lea.vmem %s118_s2, 16  ;;  %s3739_s10 = scalar_lea.vmem %s118_s2, 32 }
  0xb9   :  { %p3736_p5 = scmp.ne.s32.totalorder %s118_s2, %s3735_s9  ;;  %p3740_p6 = scmp.lt.s32.totalorder %s118_s2, %s118_s2 }
  0xba   :  { %p3741_p7 = scmp.lt.s32.totalorder %s3739_s10, %s3735_s9 }
  0xbc   :  { %p3742_p8 = por %p3741_p7, %p3740_p6 }
  0xbe   :  { %p3743_p9 = pnand %p3742_p8, %p3736_p5 }
  0xc0   :  { %3746 = shalt.err (!%p3743_p9)
}
  0xc1   :  { %120 = dma.hbm_to_vmem [thread:$0]  %s4575_s11, 16, %s118_s2, [#allocation12]  }
  0xc2   :  { %s3747_s0 = scalar_lea.hbm %s4577_s13, 96 }
  0xc3   :  { %p3748_p10 = scmp.ne.s32.totalorder %s4577_s13, %s3747_s0  ;;  %p3751_p11 = scmp.lt.u32.totalorder %s3747_s0, %s4577_s13 }
  0xc5   :  { %p3753_p12 = pnand %p3751_p11, %p3748_p10 }
  0xc7   :  { %3756 = shalt.err (!%p3753_p12)
}
  0xc8   :  { %s3757_s14 = scalar_lea.vmem %s137_s22, 96  ;;  %p3762_p0 = scmp.lt.s32.totalorder %s137_s22, %s137_s22 }
  0xc9   :  { %p3758_p13 = scmp.ne.s32.totalorder %s137_s22, %s3757_s14  ;;  %p3763_p1 = scmp.lt.s32.totalorder %s3757_s14, %s3757_s14 }
  0xcb   :  { %p3764_p2 = por %p3763_p1, %p3762_p0 }
  0xcd   :  { %p3765_p3 = pnand %p3764_p2, %p3758_p13 }
  0xcf   :  { %3768 = shalt.err (!%p3765_p3)
}
  0xd0   :  { %s3866_s11 = smov 32   ;;  %s3867_s8 = smov 2  }
  0xd1   :  { %142 = dma.hbm_to_vmem [thread:$0]  %s4577_s13, 96, %s137_s22, [#allocation15], %s3866_s11, %s3866_s11, %s3867_s8  }
  0xd2   :  { %s3868_s28 = smov [#allocation19]   ;;  %s3869_s25 = smov [#allocation22]  }
  0xd3   :  { %s161_s21 = sshll.u32 %s3868_s28, 4  ;;  %s181_s29 = sshll.u32 %s3869_s25, 4  ;;  %s162_s21 = int_to_ptr.vmem [resolvable:$true] %s161_s21  ;;  %s182_s29 = int_to_ptr.vmem [resolvable:$true] %s181_s29 }
  0xd4   :  { %s3769_s4 = scalar_lea.hbm %s4579_s15, 16 }
  0xd5   :  { %p3770_p4 = scmp.ne.s32.totalorder %s4579_s15, %s3769_s4  ;;  %p3773_p5 = scmp.lt.u32.totalorder %s3769_s4, %s4579_s15 }
  0xd7   :  { %p3775_p6 = pnand %p3773_p5, %p3770_p4 }
  0xd9   :  { %3778 = shalt.err (!%p3775_p6)
}
  0xda   :  { %s3779_s13 = scalar_lea.vmem %s162_s21, 16  ;;  %s3783_s22 = scalar_lea.vmem %s162_s21, 32 }
  0xdb   :  { %p3780_p7 = scmp.ne.s32.totalorder %s162_s21, %s3779_s13  ;;  %p3784_p8 = scmp.lt.s32.totalorder %s162_s21, %s162_s21 }
  0xdc   :  { %p3785_p9 = scmp.lt.s32.totalorder %s3783_s22, %s3779_s13 }
  0xde   :  { %p3786_p10 = por %p3785_p9, %p3784_p8 }
  0xe0   :  { %p3787_p11 = pnand %p3786_p10, %p3780_p7 }
  0xe2   :  { %3790 = shalt.err (!%p3787_p11)
}
  0xe3   :  { %164 = dma.hbm_to_vmem [thread:$0]  %s4579_s15, 16, %s162_s21, [#allocation18]  }
  0xe4   :  { %s3791_s7 = scalar_lea.hbm %s4581_s17, 32 }
  0xe5   :  { %p3792_p12 = scmp.ne.s32.totalorder %s4581_s17, %s3791_s7  ;;  %p3795_p13 = scmp.lt.u32.totalorder %s3791_s7, %s4581_s17 }
  0xe7   :  { %p3797_p0 = pnand %p3795_p13, %p3792_p12 }
  0xe9   :  { %3800 = shalt.err (!%p3797_p0)
}
  0xea   :  { %s3801_s8 = scalar_lea.vmem %s182_s29, 32  ;;  %p3806_p2 = scmp.lt.s32.totalorder %s182_s29, %s182_s29 }
  0xeb   :  { %p3802_p1 = scmp.ne.s32.totalorder %s182_s29, %s3801_s8  ;;  %p3807_p3 = scmp.lt.s32.totalorder %s3801_s8, %s3801_s8 }
  0xed   :  { %p3808_p4 = por %p3807_p3, %p3806_p2 }
  0xef   :  { %p3809_p5 = pnand %p3808_p4, %p3802_p1 }
  0xf1   :  { %3812 = shalt.err (!%p3809_p5)
}
  0xf2   :  { %184 = dma.hbm_to_vmem [thread:$0]  %s4581_s17, 32, %s182_s29, [#allocation21]  }
  0xf3   :  { %s3870_s26 = smov [#allocation23]   ;;  %s3813_s3 = scalar_lea.hbm %s4582_s18, 16 }
  0xf4   :  { %s191_s28 = sshll.u32 %s3870_s26, 4  ;;  %p3814_p6 = scmp.ne.s32.totalorder %s4582_s18, %s3813_s3  ;;  %s192_s28 = int_to_ptr.vmem [resolvable:$true] %s191_s28 }
  0xf5   :  { %p3817_p7 = scmp.lt.u32.totalorder %s3813_s3, %s4582_s18 }
  0xf7   :  { %p3819_p8 = pnand %p3817_p7, %p3814_p6 }
  0xf9   :  { %3822 = shalt.err (!%p3819_p8)
}
  0xfa   :  { %s3823_s30 = scalar_lea.vmem %s192_s28, 16  ;;  %s3827_s17 = scalar_lea.vmem %s192_s28, 32 }
  0xfb   :  { %p3824_p9 = scmp.ne.s32.totalorder %s192_s28, %s3823_s30  ;;  %p3828_p10 = scmp.lt.s32.totalorder %s192_s28, %s192_s28 }
  0xfc   :  { %p3829_p11 = scmp.lt.s32.totalorder %s3827_s17, %s3823_s30 }
  0xfe   :  { %p3830_p12 = por %p3829_p11, %p3828_p10 }
 0x100   :  { %p3831_p13 = pnand %p3830_p12, %p3824_p9 }
 0x102   :  { %3834 = shalt.err (!%p3831_p13)
}
 0x103   :  { %194 = dma.hbm_to_vmem [thread:$0]  %s4582_s18, 16, %s192_s28, [#allocation24]  }
 0x104   :  { %3835 = dma.done.wait [#allocation4], 768  }
 0x105   :  { %3836 = vsyncadd [#allocation4], 4294966528 }
 0x106   :  { %3837 = dma.done.wait [#allocation6], 32  }
 0x107   :  { %3838 = vsyncadd [#allocation6], 4294967264 }
 0x108   :  { %3839 = dma.done.wait [#allocation9], 208  }
 0x109   :  { %3840 = vsyncadd [#allocation9], 4294967088 }
 0x10a   :  { %3841 = dma.done.wait [#allocation12], 6160  }
 0x10b   :  { %3842 = vsyncadd [#allocation12], 4294961136 }
 0x10c   :  { %3843 = dma.done.wait [#allocation15], 112  }
 0x10d   :  { %3844 = vsyncadd [#allocation15], 4294967184 }
 0x10e   :  { %3845 = dma.done.wait [#allocation18], 6160  }
 0x10f   :  { %3846 = vsyncadd [#allocation18], 4294961136 }
 0x110   :  { %3847 = dma.done.wait [#allocation21], 48  }
 0x111   :  { %3848 = vsyncadd [#allocation21], 4294967248 }
 0x112   :  { %3849 = dma.done.wait [#allocation24], 16  }
 0x113   :  { %3850 = vsyncadd [#allocation24], 4294967280  ;;  %vm245_vm0 = vcmask 261120   ;;  %s4596_s18 = sld [smem:[#allocation33_spill]]  ;;  %v336_v6 = vld [vmem:[#allocation3 + $0x10] sm:$0xff]  ;;  %v243_v8 = vld [vmem:[#allocation3] sm:$0xff] }
 0x114   :  { %2757 = vmatprep.mubr.msk.f32.mxu1 %vm245_vm0, %v336_v6  ;;  %s4597_s11 = sld [smem:[#allocation35_spill]]  ;;  %2746 = vmatprep.mubr.msk.f32.mxu0 %vm245_vm0, %v243_v8  ;;  %v337_v14 = vld [vmem:[#allocation3 + $0x18] sm:$0xff]  ;;  %v244_v15 = vld [vmem:[#allocation3 + $0x8] sm:$0xff]  ;;  %v592_v16 = vld [vmem:[#allocation3 + $0x20] sm:$0xff]  ;;  %vm428_vm1 = vcmask 523264   ;;  %v3871_v55 = vmov 0.0|0.0  }
 0x115   :  { %v593_v23 = vld [vmem:[#allocation3 + $0x28] sm:$0xff]  ;;  %vm3872_vm2 = vmmov 0   ;;  %v3873_v56 = vmov 0.0   ;;  %s4598_s24 = sld [smem:[#allocation36_spill]]  ;;  %v2457_v63 = vld [vmem:[#allocation5] ss:$0 sm:$0xff] }
 0x116   :  { %v2462_v6 = vld [vmem:[%s4570_s6 + $0x88] sm:$0xff]  ;;  %vm792_vm5 = vcmask 130048   ;;  %vm1297_vm7 = vcmask 64512   ;;  %vm1806_vm9 = vcmask 1043456   ;;  %vm1802_vm10 = vcmask 31744  }
 0x117   :  { %v867_v8 = vld [vmem:[%s4570_s6 + $0x8] sm:$0xff]  ;;  %vm2315_vm12 = vcmask 1041408   ;;  %vm2311_vm13 = vcmask 15360   ;;  %vm2414_vm14 = vcmask 1024  }
 0x119   :  { %v239_v1 = vld [vmem:[%s4596_s18] sm:$0xff]  ;;  %v240_v2 = vld [vmem:[%s4596_s18 + $0x8] sm:$0xff]  ;;  %v241_v3 = vld [vmem:[%s4596_s18 + $0x10] sm:$0xff] }
 0x11a   :  { %v3199_v4 = vpack.c.bf16 %v240_v2, %v239_v1  ;;  %v242_v5 = vld [vmem:[%s4596_s18 + $0x18] sm:$0xff]  ;;  %v2432_v9 = vld [vmem:[%s4597_s11 + $0x40] sm:$0xff]  ;;  %v2433_v10 = vld [vmem:[%s4597_s11 + $0x48] sm:$0xff] }
 0x11b   :  { %v3203_v7 = vpack.c.bf16 %v242_v5, %v241_v3  ;;  %v3215_v11 = vpack.c.bf16 %v2433_v10, %v2432_v9  ;;  %v2434_v12 = vld [vmem:[%s4597_s11 + $0x50] sm:$0xff]  ;;  %v2435_v13 = vld [vmem:[%s4597_s11 + $0x58] sm:$0xff]  ;;  %v2436_v18 = vld [vmem:[%s4597_s11 + $0x60] sm:$0xff] }
 0x11c   :  { %3208 = vmatprep.subr.bf16.mxu1 %v3199_v4  ;;  %3200 = vmatprep.subr.bf16.mxu0 %v3199_v4  ;;  %v3219_v17 = vpack.c.bf16 %v2435_v13, %v2434_v12  ;;  %v2437_v19 = vld [vmem:[%s4597_s11 + $0x68] sm:$0xff]  ;;  %v2438_v21 = vld [vmem:[%s4597_s11 + $0x70] sm:$0xff]  ;;  %v2439_v22 = vld [vmem:[%s4597_s11 + $0x78] sm:$0xff] }
 0x11d   :  { %3210 = vmatpush3.bf16.msra.mxu1 %v3199_v4  ;;  %3202 = vmatpush3.bf16.msra.mxu0 %v3199_v4  ;;  %v3223_v20 = vpack.c.bf16 %v2437_v19, %v2436_v18  ;;  %v3227_v24 = vpack.c.bf16 %v2439_v22, %v2438_v21  ;;  %v327_v25 = vld [vmem:[%s4597_s11] sm:$0xff]  ;;  %v328_v26 = vld [vmem:[%s4597_s11 + $0x8] sm:$0xff]  ;;  %v329_v28 = vld [vmem:[%s4597_s11 + $0x10] sm:$0xff] }
 0x11e   :  { %3212 = vmatprep.subr.bf16.mxu1 %v3203_v7  ;;  %3204 = vmatprep.subr.bf16.mxu0 %v3203_v7  ;;  %v3231_v27 = vpack.c.bf16 %v328_v26, %v327_v25  ;;  %v330_v29 = vld [vmem:[%s4597_s11 + $0x18] sm:$0xff]  ;;  %v331_v35 = vld [vmem:[%s4597_s11 + $0x20] sm:$0xff]  ;;  %v332_v36 = vld [vmem:[%s4597_s11 + $0x28] sm:$0xff] }
 0x11f   :  { %v3235_v33 = vpack.c.bf16 %v330_v29, %v329_v28  ;;  %v3239_v37 = vpack.c.bf16 %v332_v36, %v331_v35  ;;  %v333_v38 = vld [vmem:[%s4597_s11 + $0x30] sm:$0xff]  ;;  %v334_v39 = vld [vmem:[%s4597_s11 + $0x38] sm:$0xff]  ;;  %v2446_v43 = vld [vmem:[%s4597_s11 + $0x80] sm:$0xff] }
 0x120   :  { %v3243_v41 = vpack.c.bf16 %v334_v39, %v333_v38  ;;  %v2447_v44 = vld [vmem:[%s4597_s11 + $0x88] sm:$0xff]  ;;  %v2448_v46 = vld [vmem:[%s4597_s11 + $0x90] sm:$0xff]  ;;  %v2449_v47 = vld [vmem:[%s4597_s11 + $0x98] sm:$0xff] }
 0x121   :  { %3214 = vmatpush3.bf16.msra.mxu1 %v3203_v7  ;;  %3206 = vmatpush3.bf16.msra.mxu0 %v3203_v7  ;;  %v3255_v45 = vpack.c.bf16 %v2447_v44, %v2446_v43  ;;  %v3259_v48 = vpack.c.bf16 %v2449_v47, %v2448_v46  ;;  %v2450_v49 = vld [vmem:[%s4597_s11 + $0xa0] sm:$0xff]  ;;  %v2451_v50 = vld [vmem:[%s4597_s11 + $0xa8] sm:$0xff]  ;;  %v2452_v52 = vld [vmem:[%s4597_s11 + $0xb0] sm:$0xff] }
 0x122   :  { %3248 = vmatprep.subr.bf16.mxu1 %v3199_v4  ;;  %3216 = vmatprep.subr.bf16.mxu0 %v3215_v11  ;;  %v3263_v51 = vpack.c.bf16 %v2451_v50, %v2450_v49  ;;  %v2453_v53 = vld [vmem:[%s4597_s11 + $0xb8] sm:$0xff]  ;;  %v2456_v57 = vld [vmem:[%s4598_s24] ss:$0 sm:$0xff]  ;;  %v2466_v21 = vld [vmem:[%s4570_s6 + $0xa8] sm:$0xff] }
 0x123   :  { %v3267_v54 = vpack.c.bf16 %v2453_v53, %v2452_v52  ;;  %v2461_v5 = vld [vmem:[%s4570_s6 + $0x80] sm:$0xff]  ;;  %v2467_v26 = vld [vmem:[%s4570_s6 + $0xb0] sm:$0xff]  ;;  %v873_v29 = vld [vmem:[%s4570_s6 + $0x38] sm:$0xff] }
 0x124   :  { %2758 = vmatmul.mubr.msk.f32.vlgmr.msra.gmra.mrb[0].mxu1 %vm245_vm0, %v337_v14  ;;  %2747 = vmatmul.mubr.msk.f32.vlgmr.msra.gmra.mrb[0].mxu0 %vm245_vm0, %v244_v15  ;;  %v791_v10 = vld [vmem:[%s4569_s5] sm:$0xff]  ;;  %v3278_v12 = vpack.c.bf16 %v2462_v6, %v2461_v5  ;;  %v2463_v14 = vld [vmem:[%s4570_s6 + $0x90] sm:$0xff]  ;;  %v2464_v15 = vld [vmem:[%s4570_s6 + $0x98] sm:$0xff] }
 0x125   :  { %3250 = vmatpush3.bf16.msra.mxu1 %v3199_v4  ;;  %2806 = vmatprep.mubr.msk.f32.mxu1 %vm245_vm0, %v592_v16  ;;  %v868_v16 = vld [vmem:[%s4570_s6 + $0x10] sm:$0xff]  ;;  %v3281_v18 = vpack.c.bf16 %v2464_v15, %v2463_v14  ;;  %v870_v22 = vld [vmem:[%s4570_s6 + $0x20] sm:$0xff]  ;;  %v875_v35 = vld [vmem:[%s4570_s6 + $0x48] sm:$0xff] }
 0x126   :  { %3252 = vmatprep.subr.bf16.mxu1 %v3203_v7  ;;  %3218 = vmatpush3.bf16.msra.mxu0 %v3215_v11  ;;  %v2459_v11 = vld [vmem:[%s4569_s5 + $0x8] sm:$0xff]  ;;  %v872_v28 = vld [vmem:[%s4570_s6 + $0x30] sm:$0xff]  ;;  %v2472_v39 = vld [vmem:[%s4570_s6 + $0xd8] sm:$0xff] }
 0x127   :  { %3220 = vmatprep.subr.bf16.mxu0 %v3219_v17  ;;  %v2471_v38 = vld [vmem:[%s4570_s6 + $0xd0] sm:$0xff]  ;;  %v2473_v44 = vld [vmem:[%s4570_s6 + $0xe0] sm:$0xff]  ;;  %v879_v47 = vld [vmem:[%s4570_s6 + $0x68] sm:$0xff] }
 0x128   :  { %v878_v46 = vld [vmem:[%s4570_s6 + $0x60] sm:$0xff]  ;;  %v2475_v50 = vld [vmem:[%s4570_s6 + $0xf0] sm:$0xff]  ;;  %v881_v53 = vld [vmem:[%s4570_s6 + $0x78] sm:$0xff] }
 0x129   :  { %3254 = vmatpush3.bf16.msra.mxu1 %v3203_v7  ;;  %v866_v7 = vld [vmem:[%s4570_s6] sm:$0xff]  ;;  %v3320_v49 = vpack.c.bf16 %v879_v47, %v878_v46  ;;  %v880_v52 = vld [vmem:[%s4570_s6 + $0x70] sm:$0xff]  ;;  %v2484_v6 = vld [vmem:[%s4570_s6 + $0x128] sm:$0xff] }
 0x12a   :  { %3222 = vmatpush3.bf16.msra.mxu0 %v3219_v17  ;;  %3274 = vmatprep.subr.bf16.mxu1 %v3871_v55  ;;  %v3302_v13 = vpack.c.bf16 %v867_v8, %v866_v7  ;;  %v869_v17 = vld [vmem:[%s4570_s6 + $0x18] sm:$0xff]  ;;  %v2483_v5 = vld [vmem:[%s4570_s6 + $0x120] sm:$0xff]  ;;  %v2485_v8 = vld [vmem:[%s4570_s6 + $0x130] sm:$0xff] }
 0x12b   :  { %3224 = vmatprep.subr.bf16.mxu0 %v3223_v20  ;;  %v3305_v19 = vpack.c.bf16 %v869_v17, %v868_v16  ;;  %v3335_v7 = vpack.c.bf16 %v2484_v6, %v2483_v5  ;;  %v2489_v14 = vld [vmem:[%s4570_s6 + $0x150] sm:$0xff]  ;;  %v2490_v15 = vld [vmem:[%s4570_s6 + $0x158] sm:$0xff]  ;;  %v2491_v17 = vld [vmem:[%s4570_s6 + $0x160] sm:$0xff] }
 0x12c   :  { %2807 = vmatmul.mubr.msk.f32.vlgmr.msra.gmra.mrb[2].mxu1 %vm245_vm0, %v593_v23  ;;  %v871_v23 = vld [vmem:[%s4570_s6 + $0x28] sm:$0xff]  ;;  %v3344_v16 = vpack.c.bf16 %v2490_v15, %v2489_v14  ;;  %v1474_v46 = vld [vmem:[#allocation11 + $0xd8] sm:$0xff]  ;;  %v1381_v15 = vld [vmem:[#allocation11 + $0x50] sm:$0xff] }
 0x12d   :  { %2839 = vmatprep.mubr.msk.f32.mxu1 %vm3872_vm2, %v3873_v56  ;;  %v3308_v25 = vpack.c.bf16 %v871_v23, %v870_v22  ;;  %v1375_v6 = vld [vmem:[#allocation11 + $0x20] sm:$0xff] }
 0x12e   :  { %3226 = vmatpush3.bf16.msra.mxu0 %v3223_v20  ;;  %v2465_v20 = vld [vmem:[%s4570_s6 + $0xa0] sm:$0xff] }
 0x12f   :  { %3228 = vmatprep.subr.bf16.mxu0 %v3227_v24 }
 0x132   :  { %3230 = vmatpush3.bf16.msra.mxu0 %v3227_v24  ;;  %v3284_v24 = vpack.c.bf16 %v2466_v21, %v2465_v20  ;;  %v2493_v20 = vld [vmem:[%s4570_s6 + $0x170] sm:$0xff]  ;;  %v2494_v21 = vld [vmem:[%s4570_s6 + $0x178] sm:$0xff] }
 0x133   :  { %3232 = vmatprep.subr.bf16.mxu0 %v3231_v27  ;;  %v3350_v22 = vpack.c.bf16 %v2494_v21, %v2493_v20  ;;  %v1385_v21 = vld [vmem:[#allocation11 + $0x70] sm:$0xff] }
 0x1f7   :  { %v2759_v30 = vpop.f32.mrb[0].mxu1  ;;  %v2748_v31 = vpop.f32.mrb[0].mxu0 }
 0x1f8   :  { %v410_v32 = vpop.f32.mrb[1].mxu1  ;;  %v318_v34 = vpop.f32.mrb[1].mxu0 }
 0x1f9   :  { %2776 = vmatprep.mubr.msk.f32.mxu0 %vm428_vm1, %v410_v32  ;;  %v2469_v32 = vld [vmem:[%s4570_s6 + $0xc0] sm:$0xff] }
 0x1fa   :  { %2777 = vmatmul.mubr.msk.f32.vlgmr.msra.gmra.mrb[2].mxu0 %vm428_vm1, %v2759_v30 }
 0x1fb   :  { %3234 = vmatpush3.bf16.msra.mxu0 %v3231_v27  ;;  %2795 = vmatprep.mubr.msk.f32.mxu0 %vm428_vm1, %v318_v34  ;;  %v2468_v27 = vld [vmem:[%s4570_s6 + $0xb8] sm:$0xff]  ;;  %v874_v34 = vld [vmem:[%s4570_s6 + $0x40] sm:$0xff] }
 0x1fc   :  { %3236 = vmatprep.subr.bf16.mxu0 %v3235_v33  ;;  %v3287_v30 = vpack.c.bf16 %v2468_v27, %v2467_v26 }
 0x1ff   :  { %3238 = vmatpush3.bf16.msra.mxu0 %v3235_v33  ;;  %v2808_v40 = vpop.f32.mrb[2].mxu1  ;;  %v2470_v33 = vld [vmem:[%s4570_s6 + $0xc8] sm:$0xff] }
 0x200   :  { %3240 = vmatprep.subr.bf16.mxu0 %v3239_v37  ;;  %v666_v42 = vpop.f32.mrb[3].mxu1  ;;  %v3290_v36 = vpack.c.bf16 %v2470_v33, %v2469_v32  ;;  %v1465_v33 = vld [vmem:[#allocation11 + $0x90] sm:$0xff] }
 0x203   :  { %3242 = vmatpush3.bf16.msra.mxu0 %v3239_v37  ;;  %v3314_v37 = vpack.c.bf16 %v875_v35, %v874_v34  ;;  %v1466_v34 = vld [vmem:[#allocation11 + $0x98] sm:$0xff] }
 0x204   :  { %3244 = vmatprep.subr.bf16.mxu0 %v3243_v41  ;;  %v3356_v35 = vpack.c.bf16 %v1466_v34, %v1465_v33 }
 0x207   :  { %3246 = vmatpush3.bf16.msra.mxu0 %v3243_v41  ;;  %v877_v41 = vld [vmem:[%s4570_s6 + $0x58] sm:$0xff] }
 0x208   :  { %3256 = vmatprep.subr.bf16.mxu0 %v3255_v45 }
 0x20a   :  { %2796 = vmatmul.mubr.msk.f32.vlgmr.msra.gmra.mrb[2].mxu0 %vm428_vm1, %v2748_v31  ;;  %v3311_v31 = vpack.c.bf16 %v873_v29, %v872_v28 }
 0x20b   :  { %3258 = vmatpush3.bf16.msra.mxu0 %v3255_v45  ;;  %2825 = vmatprep.mubr.msk.f32.mxu0 %vm428_vm1, %v666_v42  ;;  %v3293_v42 = vpack.c.bf16 %v2472_v39, %v2471_v38  ;;  %v2474_v45 = vld [vmem:[%s4570_s6 + $0xe8] sm:$0xff]  ;;  %v1469_v39 = vld [vmem:[#allocation11 + $0xb0] sm:$0xff] }
 0x20c   :  { %3260 = vmatprep.subr.bf16.mxu0 %v3259_v48 }
 0x20f   :  { %3262 = vmatpush3.bf16.msra.mxu0 %v3259_v48  ;;  %v3296_v48 = vpack.c.bf16 %v2474_v45, %v2473_v44  ;;  %v1473_v45 = vld [vmem:[#allocation11 + $0xd0] sm:$0xff] }
 0x210   :  { %3264 = vmatprep.subr.bf16.mxu0 %v3263_v51  ;;  %v3368_v47 = vpack.c.bf16 %v1474_v46, %v1473_v45  ;;  %v1704_v45 = vld [vmem:[#allocation11 + $0x148] sm:$0xff] }
 0x213   :  { %3266 = vmatpush3.bf16.msra.mxu0 %v3263_v51  ;;  %v2476_v51 = vld [vmem:[%s4570_s6 + $0xf8] sm:$0xff] }
 0x214   :  { %3268 = vmatprep.subr.bf16.mxu0 %v3267_v54 }
 0x217   :  { %3270 = vmatpush3.bf16.msra.mxu0 %v3267_v54  ;;  %v3299_v54 = vpack.c.bf16 %v2476_v51, %v2475_v50 }
 0x218   :  { %3271 = vmatprep.subr.bf16.mxu0 %v3871_v55 }
 0x21a   :  { %2826 = vmatmul.mubr.msk.f32.vlgmr.msra.gmra.mrb[2].mxu0 %vm428_vm1, %v2808_v40  ;;  %v876_v40 = vld [vmem:[%s4570_s6 + $0x50] sm:$0xff] }
 0x21b   :  { %2832 = vmatprep.mubr.msk.f32.mxu0 %vm3872_vm2, %v3873_v56  ;;  %v3317_v43 = vpack.c.bf16 %v877_v41, %v876_v40  ;;  %v1470_v40 = vld [vmem:[#allocation11 + $0xb8] sm:$0xff] }
 0x21c   :  { %v3362_v41 = vpack.c.bf16 %v1470_v40, %v1469_v39  ;;  %v1620_v39 = vld [vmem:[#allocation10 + $0x8] sm:$0xf] }
 0x2ed   :  { %v2827_v58 = vpop.f32.mrb[2].mxu0 }
 0x2ee   :  { %v775_v59 = vadd.f32 %v2827_v58, %v2456_v57  ;;  %v756_v60 = vpop.f32.mrb[3].mxu0  ;;  %v2479_v58 = vld [vmem:[%s4570_s6 + $0x100] sm:$0xff] }
 0x2ef   :  { %v774_v61 = vadd.f32 %v2456_v57, %v756_v60  ;;  %v3323_v57 = vpack.c.bf16 %v881_v53, %v880_v52  ;;  %v2495_v52 = vld [vmem:[#allocation7] ss:$0 sm:$0xff] }
 0x2f0   :  { %vm777_vm3 = vcmp.ge.f32.partialorder %v775_v59, 0.0  ;;  %v779_v62 = vmul.f32 0.2, %v775_v59 }
 0x2f1   :  { %vm776_vm4 = vcmp.ge.f32.partialorder %v774_v61, 0.0  ;;  %v778_v0 = vmul.f32 0.2, %v774_v61 }
 0x2f2   :  { %v781_v1 = vsel %vm777_vm3, %v775_v59, %v779_v62  ;;  %v2480_v59 = vld [vmem:[%s4570_s6 + $0x108] sm:$0xff] }
 0x2f3   :  { %v790_v2 = vadd.f32 %v2457_v63, %v781_v1  ;;  %v780_v3 = vsel %vm776_vm4, %v774_v61, %v778_v0  ;;  %v2477_v0 = vld [vmem:[%s4569_s5 + $0x10] sm:$0xff]  ;;  %v3329_v1 = vpack.c.bf16 %v2480_v59, %v2479_v58 }
 0x2f4   :  { %v789_v4 = vadd.f32 %v2457_v63, %v780_v3  ;;  %v2482_v3 = vld [vmem:[%s4570_s6 + $0x118] sm:$0xff]  ;;  %v2496_v59 = vld [vmem:[#allocation8] ss:$0 sm:$0xff] }
 0x2f6   :  { %v4284_v9 = vpack.c.bf16 %v790_v2, %v789_v4  ;;  %v2481_v2 = vld [vmem:[%s4570_s6 + $0x110] sm:$0xff] }
 0x2f7   :  { %v3332_v4 = vpack.c.bf16 %v2482_v3, %v2481_v2  ;;  %v1373_v3 = vld [vmem:[#allocation11 + $0x10] sm:$0xff] }
 0x2f8   :  { %3273 = vmatpush3.bf16.msra.mxu0 %v4284_v9  ;;  %3276 = vmatpush3.bf16.msra.mxu1 %v4284_v9 }
 0x2f9   :  { %3277 = vmatprep.subr.bf16.mxu1 %v3871_v55  ;;  %3301 = vmatprep.subr.bf16.mxu0 %v3871_v55 }
 0x2fb   :  { %2833 = vmatmul.mubr.msk.f32.vlgmr.msra.gmra.mrb[4].mxu0 %vm792_vm5, %v791_v10  ;;  %2840 = vmatmul.mubr.msk.f32.vlgmr.msra.gmra.mrb[4].mxu1 %vm792_vm5, %v2459_v11  ;;  %v2487_v11 = vld [vmem:[%s4570_s6 + $0x140] sm:$0xff] }
 0x2fc   :  { %3279 = vmatpush3.bf16.msra.mxu1 %v3278_v12  ;;  %3303 = vmatpush3.bf16.msra.mxu0 %v3302_v13  ;;  %v2488_v12 = vld [vmem:[%s4570_s6 + $0x148] sm:$0xff] }
 0x2fd   :  { %3280 = vmatprep.subr.bf16.mxu1 %v3871_v55  ;;  %3304 = vmatprep.subr.bf16.mxu0 %v3871_v55  ;;  %v3341_v13 = vpack.c.bf16 %v2488_v12, %v2487_v11  ;;  %v1379_v12 = vld [vmem:[#allocation11 + $0x40] sm:$0xff] }
 0x2fe   :  { %2874 = vmatprep.mubr.msk.f32.mxu1 %vm3872_vm2, %v3873_v56  ;;  %2909 = vmatprep.mubr.msk.f32.mxu0 %vm3872_vm2, %v3873_v56 }
 0x300   :  { %3282 = vmatpush3.bf16.msra.mxu1 %v3281_v18  ;;  %3306 = vmatpush3.bf16.msra.mxu0 %v3305_v19  ;;  %v2492_v18 = vld [vmem:[%s4570_s6 + $0x168] sm:$0xff] }
 0x301   :  { %3283 = vmatprep.subr.bf16.mxu1 %v3871_v55  ;;  %3307 = vmatprep.subr.bf16.mxu0 %v3871_v55  ;;  %v3347_v19 = vpack.c.bf16 %v2492_v18, %v2491_v17  ;;  %v1383_v18 = vld [vmem:[#allocation11 + $0x60] sm:$0xff] }
 0x304   :  { %3285 = vmatpush3.bf16.msra.mxu1 %v3284_v24  ;;  %3309 = vmatpush3.bf16.msra.mxu0 %v3308_v25 }
 0x305   :  { %3286 = vmatprep.subr.bf16.mxu1 %v3871_v55  ;;  %3310 = vmatprep.subr.bf16.mxu0 %v3871_v55 }
 0x308   :  { %3288 = vmatpush3.bf16.msra.mxu1 %v3287_v30  ;;  %3312 = vmatpush3.bf16.msra.mxu0 %v3311_v31  ;;  %v1463_v30 = vld [vmem:[#allocation11 + $0x80] sm:$0xff]  ;;  %v1464_v31 = vld [vmem:[#allocation11 + $0x88] sm:$0xff] }
 0x309   :  { %3289 = vmatprep.subr.bf16.mxu1 %v3871_v55  ;;  %3313 = vmatprep.subr.bf16.mxu0 %v3871_v55  ;;  %v3353_v32 = vpack.c.bf16 %v1464_v31, %v1463_v30  ;;  %v1697_v31 = vld [vmem:[#allocation11 + $0x110] sm:$0xff] }
 0x30c   :  { %3291 = vmatpush3.bf16.msra.mxu1 %v3290_v36  ;;  %3315 = vmatpush3.bf16.msra.mxu0 %v3314_v37  ;;  %v1467_v36 = vld [vmem:[#allocation11 + $0xa0] sm:$0xff]  ;;  %v1468_v37 = vld [vmem:[#allocation11 + $0xa8] sm:$0xff] }
 0x30d   :  { %3292 = vmatprep.subr.bf16.mxu1 %v3871_v55  ;;  %3316 = vmatprep.subr.bf16.mxu0 %v3871_v55  ;;  %v3359_v38 = vpack.c.bf16 %v1468_v37, %v1467_v36  ;;  %v1699_v36 = vld [vmem:[#allocation11 + $0x120] sm:$0xff]  ;;  %v1700_v37 = vld [vmem:[#allocation11 + $0x128] sm:$0xff] }
 0x30e   :  { %v3407_v40 = vpack.c.bf16 %v1700_v37, %v1699_v36  ;;  %v1973_v36 = vld [vmem:[#allocation17 + $0x88] sm:$0xff]  ;;  %v1897_v37 = vld [vmem:[#allocation16 + $0x2] sm:$0x3] }
 0x310   :  { %3294 = vmatpush3.bf16.msra.mxu1 %v3293_v42  ;;  %3318 = vmatpush3.bf16.msra.mxu0 %v3317_v43  ;;  %v1471_v42 = vld [vmem:[#allocation11 + $0xc0] sm:$0xff]  ;;  %v1472_v43 = vld [vmem:[#allocation11 + $0xc8] sm:$0xff] }
 0x311   :  { %3295 = vmatprep.subr.bf16.mxu1 %v3871_v55  ;;  %3319 = vmatprep.subr.bf16.mxu0 %v3871_v55  ;;  %v3365_v44 = vpack.c.bf16 %v1472_v43, %v1471_v42  ;;  %v1702_v42 = vld [vmem:[#allocation11 + $0x138] sm:$0xff] }
 0x314   :  { %3297 = vmatpush3.bf16.msra.mxu1 %v3296_v48  ;;  %3321 = vmatpush3.bf16.msra.mxu0 %v3320_v49  ;;  %v1475_v48 = vld [vmem:[#allocation11 + $0xe0] sm:$0xff]  ;;  %v1476_v49 = vld [vmem:[#allocation11 + $0xe8] sm:$0xff] }
 0x315   :  { %3298 = vmatprep.subr.bf16.mxu1 %v3871_v55  ;;  %3322 = vmatprep.subr.bf16.mxu0 %v3871_v55  ;;  %v3371_v50 = vpack.c.bf16 %v1476_v49, %v1475_v48  ;;  %v1706_v48 = vld [vmem:[#allocation11 + $0x158] sm:$0xff] }
 0x318   :  { %3300 = vmatpush3.bf16.msra.mxu1 %v3299_v54  ;;  %3324 = vmatpush3.bf16.msra.mxu0 %v3323_v57 }
 0x319   :  { %3325 = vmatprep.subr.bf16.mxu1 %v3871_v55  ;;  %2954 = vmatprep.subr.mxu0 %v3873_v56 }
 0x3ce   :  { %v862_v60 = vpop.f32.mrb[4].mxu0  ;;  %v953_v61 = vpop.f32.mrb[4].mxu1 }
 0x3cf   :  { %v2841_v62 = vpop.f32.mrb[5].mxu1  ;;  %2875 = vmatmul.mubr.f32.vlgmr.msra.gmra.mrb[6].mxu1 %v953_v61  ;;  %2910 = vmatmul.mubr.f32.vlgmr.msra.gmra.mrb[6].mxu0 %v862_v60  ;;  %v2834_v63 = vpop.f32.mrb[5].mxu0 }
 0x3d0   :  { %3327 = vmatpush3.bf16.msra.mxu1 %v4284_v9  ;;  %2916 = vmatprep.mubr.msk.f32.mxu1 %vm3872_vm2, %v3873_v56  ;;  %v2486_v9 = vld [vmem:[%s4570_s6 + $0x138] sm:$0xff]  ;;  %v1371_v63 = vld [vmem:[#allocation11] sm:$0xff] }
 0x3d1   :  { %3328 = vmatprep.subr.bf16.mxu1 %v3871_v55  ;;  %2956 = vmatprep.mubr.msk.f32.mxu0 %vm3872_vm2, %v3873_v56  ;;  %v3338_v10 = vpack.c.bf16 %v2486_v9, %v2485_v8  ;;  %v1296_v62 = vld [vmem:[#allocation10] sm:$0xf] }
 0x3d2   :  { %v1377_v9 = vld [vmem:[#allocation11 + $0x30] sm:$0xff] }
 0x3d3   :  { %2917 = vmatmul.mubr.msk.f32.vlgmr.msra.gmra.mrb[8].mxu1 %vm792_vm5, %v2477_v0  ;;  %v1372_v0 = vld [vmem:[#allocation11 + $0x8] sm:$0xff] }
 0x3d4   :  { %3330 = vmatpush3.bf16.msra.mxu1 %v3329_v1  ;;  %2951 = vmatprep.mubr.msk.f32.mxu1 %vm3872_vm2, %v3873_v56  ;;  %v1388_v1 = vld [vmem:[#allocation10 + $0x4] sm:$0xf]  ;;  %v3377_v2 = vpack.c.bf16 %v1372_v0, %v1371_v63 }
 0x3d5   :  { %3331 = vmatprep.subr.bf16.mxu1 %v3871_v55 }
 0x3d8   :  { %3333 = vmatpush3.bf16.msra.mxu1 %v3332_v4  ;;  %v1374_v4 = vld [vmem:[#allocation11 + $0x18] sm:$0xff] }
 0x3d9   :  { %3334 = vmatprep.subr.bf16.mxu1 %v3871_v55  ;;  %v3380_v5 = vpack.c.bf16 %v1374_v4, %v1373_v3  ;;  %v1882_v4 = vld [vmem:[#allocation17 + $0x10] sm:$0xff] }
 0x3dc   :  { %3336 = vmatpush3.bf16.msra.mxu1 %v3335_v7  ;;  %v1376_v7 = vld [vmem:[#allocation11 + $0x28] sm:$0xff] }
 0x3dd   :  { %3337 = vmatprep.subr.bf16.mxu1 %v3871_v55  ;;  %v3383_v8 = vpack.c.bf16 %v1376_v7, %v1375_v6  ;;  %v1884_v7 = vld [vmem:[#allocation17 + $0x20] sm:$0xff] }
 0x3e0   :  { %3339 = vmatpush3.bf16.msra.mxu1 %v3338_v10  ;;  %v1378_v10 = vld [vmem:[#allocation11 + $0x38] sm:$0xff] }
 0x3e1   :  { %3340 = vmatprep.subr.bf16.mxu1 %v3871_v55  ;;  %v3386_v11 = vpack.c.bf16 %v1378_v10, %v1377_v9  ;;  %v1886_v10 = vld [vmem:[#allocation17 + $0x30] sm:$0xff] }
 0x3e4   :  { %3342 = vmatpush3.bf16.msra.mxu1 %v3341_v13  ;;  %v1380_v13 = vld [vmem:[#allocation11 + $0x48] sm:$0xff] }
 0x3e5   :  { %3343 = vmatprep.subr.bf16.mxu1 %v3871_v55  ;;  %v3389_v14 = vpack.c.bf16 %v1380_v13, %v1379_v12  ;;  %v1888_v13 = vld [vmem:[#allocation17 + $0x40] sm:$0xff] }
 0x3e8   :  { %3345 = vmatpush3.bf16.msra.mxu1 %v3344_v16  ;;  %v1382_v16 = vld [vmem:[#allocation11 + $0x58] sm:$0xff] }
 0x3e9   :  { %3346 = vmatprep.subr.bf16.mxu1 %v3871_v55  ;;  %v3392_v17 = vpack.c.bf16 %v1382_v16, %v1381_v15  ;;  %v1890_v16 = vld [vmem:[#allocation17 + $0x50] sm:$0xff] }
 0x3ec   :  { %3348 = vmatpush3.bf16.msra.mxu1 %v3347_v19  ;;  %v1384_v19 = vld [vmem:[#allocation11 + $0x68] sm:$0xff] }
 0x3ed   :  { %3349 = vmatprep.subr.bf16.mxu1 %v3871_v55  ;;  %v3395_v20 = vpack.c.bf16 %v1384_v19, %v1383_v18  ;;  %v1892_v19 = vld [vmem:[#allocation17 + $0x60] sm:$0xff] }
 0x3f0   :  { %3351 = vmatpush3.bf16.msra.mxu1 %v3350_v22  ;;  %v1386_v22 = vld [vmem:[#allocation11 + $0x78] sm:$0xff] }
 0x3f1   :  { %3352 = vmatprep.subr.bf16.mxu1 %v3871_v55 }
 0x4a2   :  { %v1040_v23 = vpop.f32.mrb[6].mxu1  ;;  %v1110_v24 = vpop.f32.mrb[6].mxu0 }
 0x4a3   :  { %v1111_v25 = vadd.f32 %v1110_v24, %v1040_v23  ;;  %v2876_v26 = vpop.f32.mrb[7].mxu1  ;;  %v2911_v27 = vpop.f32.mrb[7].mxu0  ;;  %v3398_v23 = vpack.c.bf16 %v1386_v22, %v1385_v21  ;;  %v1477_v24 = vld [vmem:[#allocation11 + $0xf0] sm:$0xff]  ;;  %v1894_v22 = vld [vmem:[#allocation17 + $0x70] sm:$0xff] }
 0x4a4   :  { %v1695_v27 = vld [vmem:[#allocation11 + $0x100] sm:$0xff] }
 0x4a6   :  { %v1185_v28 = vpop.f32.mrb[8].mxu1 }
 0x4a7   :  { %v2918_v29 = vpop.f32.mrb[9].mxu1  ;;  %2952 = vmatmul.mubr.f32.vlgmr.msra.gmra.mrb[10].mxu1 %v1185_v28  ;;  %v1696_v28 = vld [vmem:[#allocation11 + $0x108] sm:$0xff] }
 0x4a8   :  { %2996 = vmatprep.mubr.msk.f32.mxu1 %vm3872_vm2, %v3873_v56  ;;  %3354 = vmatpush3.bf16.msra.mxu1 %v3353_v32  ;;  %v3401_v29 = vpack.c.bf16 %v1696_v28, %v1695_v27  ;;  %v1698_v32 = vld [vmem:[#allocation11 + $0x118] sm:$0xff] }
 0x4a9   :  { %3355 = vmatprep.subr.bf16.mxu1 %v3871_v55  ;;  %v3404_v34 = vpack.c.bf16 %v1698_v32, %v1697_v31  ;;  %v2501_v31 = vld [vmem:[#allocation14] ss:$0 sm:$0xff] }
 0x4ac   :  { %3357 = vmatpush3.bf16.msra.mxu1 %v3356_v35 }
 0x4ad   :  { %3358 = vmatprep.subr.bf16.mxu1 %v3871_v55 }
 0x4b0   :  { %3360 = vmatpush3.bf16.msra.mxu1 %v3359_v38 }
 0x4b1   :  { %3361 = vmatprep.subr.bf16.mxu1 %v3871_v55 }
 0x4b4   :  { %3363 = vmatpush3.bf16.msra.mxu1 %v3362_v41  ;;  %v1701_v41 = vld [vmem:[#allocation11 + $0x130] sm:$0xff] }
 0x4b5   :  { %3364 = vmatprep.subr.bf16.mxu1 %v3871_v55  ;;  %v3410_v43 = vpack.c.bf16 %v1702_v42, %v1701_v41  ;;  %v1976_v42 = vld [vmem:[#allocation17 + $0xa0] sm:$0xff] }
 0x4b8   :  { %3366 = vmatpush3.bf16.msra.mxu1 %v3365_v44  ;;  %v1703_v44 = vld [vmem:[#allocation11 + $0x140] sm:$0xff] }
 0x4b9   :  { %3367 = vmatprep.subr.bf16.mxu1 %v3871_v55  ;;  %v3413_v46 = vpack.c.bf16 %v1704_v45, %v1703_v44  ;;  %v1978_v45 = vld [vmem:[#allocation17 + $0xb0] sm:$0xff] }
 0x4bc   :  { %3369 = vmatpush3.bf16.msra.mxu1 %v3368_v47  ;;  %v1705_v47 = vld [vmem:[#allocation11 + $0x150] sm:$0xff] }
 0x4bd   :  { %3370 = vmatprep.subr.bf16.mxu1 %v3871_v55  ;;  %v3416_v49 = vpack.c.bf16 %v1706_v48, %v1705_v47  ;;  %v1980_v48 = vld [vmem:[#allocation17 + $0xc0] sm:$0xff] }
 0x4c0   :  { %3372 = vmatpush3.bf16.msra.mxu1 %v3371_v50  ;;  %v1707_v50 = vld [vmem:[#allocation11 + $0x160] sm:$0xff] }
 0x4c1   :  { %3373 = vmatprep.subr.bf16.mxu1 %v3871_v55 }
 0x57a   :  { %v1272_v51 = vpop.f32.mrb[10].mxu1 }
 0x57b   :  { %v1276_v53 = vadd.f32 %v1272_v51, %v1111_v25  ;;  %v2953_v54 = vpop.f32.mrb[11].mxu1  ;;  %v1478_v25 = vld [vmem:[#allocation11 + $0xf8] sm:$0xff]  ;;  %v1708_v51 = vld [vmem:[#allocation11 + $0x168] sm:$0xff] }
 0x57c   :  { %v3374_v26 = vpack.c.bf16 %v1478_v25, %v1477_v24  ;;  %v1710_v54 = vld [vmem:[#allocation11 + $0x178] sm:$0xff] }
 0x57d   :  { %v1284_v57 = vadd.f32 %v2495_v52, %v1276_v53  ;;  %v3419_v52 = vpack.c.bf16 %v1708_v51, %v1707_v50  ;;  %v1709_v53 = vld [vmem:[#allocation11 + $0x170] sm:$0xff]  ;;  %v1982_v51 = vld [vmem:[#allocation17 + $0xd0] sm:$0xff] }
 0x57e   :  { %3375 = vmatpush3.bf16.msra.mxu1 %v3374_v26  ;;  %v2500_v26 = vld [vmem:[#allocation13] ss:$0 sm:$0xff] }
 0x57f   :  { %vm1285_vm6 = vcmp.ge.f32.partialorder %v1284_v57, 0.0  ;;  %v1286_v58 = vmul.f32 0.2, %v1284_v57  ;;  %3034 = vmatprep.subr.mxu1 %v3873_v56 }
 0x581   :  { %v1287_v60 = vsel %vm1285_vm6, %v1284_v57, %v1286_v58  ;;  %v3422_v57 = vpack.c.bf16 %v1710_v54, %v1709_v53  ;;  %v1984_v54 = vld [vmem:[#allocation17 + $0xe0] sm:$0xff] }
 0x582   :  { %v4479_v61 = vadd.f32 %v2496_v59, %v1287_v60 }
 0x584   :  { %2955 = vmatpush3.msra.mxu0 %v4479_v61 }
 0x585   :  { %2957 = vmatmul.mubr.msk.f32.vlgmr.msra.gmra.mrb[8].mxu0 %vm1297_vm7, %v1296_v62  ;;  %2959 = vmatprep.subr.mxu0 %v3873_v56 }
 0x586   :  { %2960 = vmatpush3.msra.mxu0 %v4479_v61  ;;  %2961 = vmatprep.mubr.msk.f32.mxu0 %vm3872_vm2, %v3873_v56 }
 0x587   :  { %3376 = vmatprep.subr.bf16.mxu0 %v3871_v55 }
 0x589   :  { %2962 = vmatmul.mubr.msk.f32.vlgmr.msra.gmra.mrb[10].mxu0 %vm1297_vm7, %v1388_v1  ;;  %v1880_v1 = vld [vmem:[#allocation17] sm:$0xff] }
 0x58a   :  { %3378 = vmatpush3.bf16.msra.mxu0 %v3377_v2  ;;  %3031 = vmatprep.mubr.msk.f32.mxu0 %vm3872_vm2, %v3873_v56  ;;  %v1881_v2 = vld [vmem:[#allocation17 + $0x8] sm:$0xff] }
 0x58b   :  { %3379 = vmatprep.subr.bf16.mxu0 %v3871_v55  ;;  %v3449_v3 = vpack.c.bf16 %v1881_v2, %v1880_v1  ;;  %v2205_v1 = vld [vmem:[#allocation17 + $0x108] sm:$0xff] }
 0x58e   :  { %3381 = vmatpush3.bf16.msra.mxu0 %v3380_v5  ;;  %v1883_v5 = vld [vmem:[#allocation17 + $0x18] sm:$0xff] }
 0x58f   :  { %3382 = vmatprep.subr.bf16.mxu0 %v3871_v55  ;;  %v3452_v6 = vpack.c.bf16 %v1883_v5, %v1882_v4  ;;  %v2129_v4 = vld [vmem:[#allocation16 + $0x4] sm:$0x3] }
 0x592   :  { %3384 = vmatpush3.bf16.msra.mxu0 %v3383_v8  ;;  %v1885_v8 = vld [vmem:[#allocation17 + $0x28] sm:$0xff] }
 0x593   :  { %3385 = vmatprep.subr.bf16.mxu0 %v3871_v55  ;;  %v3455_v9 = vpack.c.bf16 %v1885_v8, %v1884_v7  ;;  %v2207_v7 = vld [vmem:[#allocation17 + $0x118] sm:$0xff] }
 0x596   :  { %3387 = vmatpush3.bf16.msra.mxu0 %v3386_v11  ;;  %v1887_v11 = vld [vmem:[#allocation17 + $0x38] sm:$0xff] }
 0x597   :  { %3388 = vmatprep.subr.bf16.mxu0 %v3871_v55  ;;  %v3458_v12 = vpack.c.bf16 %v1887_v11, %v1886_v10  ;;  %v2209_v10 = vld [vmem:[#allocation17 + $0x128] sm:$0xff] }
 0x59a   :  { %3390 = vmatpush3.bf16.msra.mxu0 %v3389_v14  ;;  %v1889_v14 = vld [vmem:[#allocation17 + $0x48] sm:$0xff] }
 0x59b   :  { %3391 = vmatprep.subr.bf16.mxu0 %v3871_v55  ;;  %v3461_v15 = vpack.c.bf16 %v1889_v14, %v1888_v13  ;;  %v2211_v13 = vld [vmem:[#allocation17 + $0x138] sm:$0xff] }
 0x59e   :  { %3393 = vmatpush3.bf16.msra.mxu0 %v3392_v17  ;;  %v1891_v17 = vld [vmem:[#allocation17 + $0x58] sm:$0xff] }
 0x59f   :  { %3394 = vmatprep.subr.bf16.mxu0 %v3871_v55  ;;  %v3464_v18 = vpack.c.bf16 %v1891_v17, %v1890_v16  ;;  %v2213_v16 = vld [vmem:[#allocation17 + $0x148] sm:$0xff] }
 0x5a2   :  { %3396 = vmatpush3.bf16.msra.mxu0 %v3395_v20  ;;  %v1893_v20 = vld [vmem:[#allocation17 + $0x68] sm:$0xff] }
 0x5a3   :  { %3397 = vmatprep.subr.bf16.mxu0 %v3871_v55  ;;  %v3467_v21 = vpack.c.bf16 %v1893_v20, %v1892_v19  ;;  %v2216_v20 = vld [vmem:[#allocation17 + $0x160] sm:$0xff] }
 0x5a6   :  { %3399 = vmatpush3.bf16.msra.mxu0 %v3398_v23  ;;  %v1895_v23 = vld [vmem:[#allocation17 + $0x78] sm:$0xff] }
 0x5a7   :  { %3400 = vmatprep.subr.bf16.mxu0 %v3871_v55  ;;  %v3470_v24 = vpack.c.bf16 %v1895_v23, %v1894_v22  ;;  %v2218_v23 = vld [vmem:[#allocation17 + $0x170] sm:$0xff] }
 0x658   :  { %v1367_v30 = vpop.f32.mrb[8].mxu0 }
 0x659   :  { %v2958_v33 = vpop.f32.mrb[9].mxu0  ;;  %3032 = vmatmul.mubr.f32.vlgmr.msra.gmra.mrb[12].mxu0 %v1367_v30 }
 0x65a   :  { %3402 = vmatpush3.bf16.msra.mxu0 %v3401_v29  ;;  %3071 = vmatprep.mubr.msk.f32.mxu0 %vm3872_vm2, %v3873_v56 }
 0x65b   :  { %3403 = vmatprep.subr.bf16.mxu0 %v3871_v55 }
 0x65c   :  { %v1458_v35 = vpop.f32.mrb[10].mxu0 }
 0x65d   :  { %v2963_v38 = vpop.f32.mrb[11].mxu0  ;;  %2997 = vmatmul.mubr.f32.vlgmr.msra.gmra.mrb[12].mxu1 %v1458_v35  ;;  %v1972_v35 = vld [vmem:[#allocation17 + $0x80] sm:$0xff] }
 0x65e   :  { %3035 = vmatpush3.msra.mxu1 %v4479_v61  ;;  %3036 = vmatprep.mubr.msk.f32.mxu1 %vm3872_vm2, %v3873_v56  ;;  %v3425_v38 = vpack.c.bf16 %v1973_v36, %v1972_v35 }
 0x65f   :  { %3405 = vmatpush3.bf16.msra.mxu0 %v3404_v34  ;;  %3074 = vmatprep.subr.mxu1 %v3873_v56  ;;  %v1801_v34 = vld [vmem:[#allocation16] sm:$0x3] }
 0x660   :  { %3406 = vmatprep.subr.bf16.mxu0 %v3871_v55 }
 0x661   :  { %3037 = vmatmul.mubr.msk.f32.vlgmr.msra.gmra.mrb[14].mxu1 %vm1297_vm7, %v1620_v39  ;;  %v1974_v39 = vld [vmem:[#allocation17 + $0x90] sm:$0xff] }
 0x662   :  { %3076 = vmatprep.mubr.msk.f32.mxu1 %vm3872_vm2, %v3873_v56 }
 0x663   :  { %3408 = vmatpush3.bf16.msra.mxu0 %v3407_v40  ;;  %v1975_v40 = vld [vmem:[#allocation17 + $0x98] sm:$0xff] }
 0x664   :  { %3409 = vmatprep.subr.bf16.mxu0 %v3871_v55  ;;  %v3428_v41 = vpack.c.bf16 %v1975_v40, %v1974_v39 }
 0x667   :  { %3411 = vmatpush3.bf16.msra.mxu0 %v3410_v43  ;;  %v1977_v43 = vld [vmem:[#allocation17 + $0xa8] sm:$0xff] }
 0x668   :  { %3412 = vmatprep.subr.bf16.mxu0 %v3871_v55  ;;  %v3431_v44 = vpack.c.bf16 %v1977_v43, %v1976_v42  ;;  %v2512_v42 = vld [vmem:[#allocation23] ss:$0 sm:$0xff] }
 0x66b   :  { %3414 = vmatpush3.bf16.msra.mxu0 %v3413_v46  ;;  %v1979_v46 = vld [vmem:[#allocation17 + $0xb8] sm:$0xff] }
 0x66c   :  { %3415 = vmatprep.subr.bf16.mxu0 %v3871_v55  ;;  %v3434_v47 = vpack.c.bf16 %v1979_v46, %v1978_v45 }
 0x66f   :  { %3417 = vmatpush3.bf16.msra.mxu0 %v3416_v49  ;;  %v1981_v49 = vld [vmem:[#allocation17 + $0xc8] sm:$0xff] }
 0x670   :  { %3418 = vmatprep.subr.bf16.mxu0 %v3871_v55  ;;  %v3437_v50 = vpack.c.bf16 %v1981_v49, %v1980_v48 }
 0x673   :  { %3420 = vmatpush3.bf16.msra.mxu0 %v3419_v52  ;;  %v1983_v52 = vld [vmem:[#allocation17 + $0xd8] sm:$0xff] }
 0x674   :  { %3421 = vmatprep.subr.bf16.mxu0 %v3871_v55  ;;  %v3440_v53 = vpack.c.bf16 %v1983_v52, %v1982_v51 }
 0x677   :  { %3423 = vmatpush3.bf16.msra.mxu0 %v3422_v57  ;;  %v1985_v57 = vld [vmem:[#allocation17 + $0xe8] sm:$0xff] }
 0x678   :  { %3448 = vmatprep.subr.bf16.mxu0 %v3871_v55 }
 0x72c   :  { %v1615_v58 = vpop.f32.mrb[12].mxu0 }
 0x72d   :  { %v3033_v59 = vpop.f32.mrb[13].mxu0 }
 0x72e   :  { %v1986_v59 = vld [vmem:[#allocation17 + $0xf0] sm:$0xff] }
 0x730   :  { %v1545_v60 = vpop.f32.mrb[12].mxu1 }
 0x731   :  { %v1616_v61 = vadd.f32 %v1615_v58, %v1545_v60  ;;  %v2998_v62 = vpop.f32.mrb[13].mxu1  ;;  %v3443_v58 = vpack.c.bf16 %v1985_v57, %v1984_v54  ;;  %v1987_v60 = vld [vmem:[#allocation17 + $0xf8] sm:$0xff] }
 0x734   :  { %v1690_v63 = vpop.f32.mrb[14].mxu1 }
 0x735   :  { %v3038_v0 = vpop.f32.mrb[15].mxu1  ;;  %3072 = vmatmul.mubr.f32.vlgmr.msra.gmra.mrb[14].mxu0 %v1690_v63 }
 0x736   :  { %3151 = vmatprep.mubr.msk.f32.mxu0 %vm3872_vm2, %v3873_v56  ;;  %3450 = vmatpush3.bf16.msra.mxu0 %v3449_v3  ;;  %v2204_v0 = vld [vmem:[#allocation17 + $0x100] sm:$0xff] }
 0x737   :  { %3451 = vmatprep.subr.bf16.mxu0 %v3871_v55  ;;  %v3473_v5 = vpack.c.bf16 %v2205_v1, %v2204_v0 }
 0x73a   :  { %3453 = vmatpush3.bf16.msra.mxu0 %v3452_v6  ;;  %v2206_v6 = vld [vmem:[#allocation17 + $0x110] sm:$0xff] }
 0x73b   :  { %3454 = vmatprep.subr.bf16.mxu0 %v3871_v55  ;;  %v3476_v8 = vpack.c.bf16 %v2207_v7, %v2206_v6 }
 0x73e   :  { %3456 = vmatpush3.bf16.msra.mxu0 %v3455_v9  ;;  %v2208_v9 = vld [vmem:[#allocation17 + $0x120] sm:$0xff] }
 0x73f   :  { %3457 = vmatprep.subr.bf16.mxu0 %v3871_v55  ;;  %v3479_v11 = vpack.c.bf16 %v2209_v10, %v2208_v9 }
 0x742   :  { %3459 = vmatpush3.bf16.msra.mxu0 %v3458_v12  ;;  %v2210_v12 = vld [vmem:[#allocation17 + $0x130] sm:$0xff] }
 0x743   :  { %3460 = vmatprep.subr.bf16.mxu0 %v3871_v55  ;;  %v3482_v14 = vpack.c.bf16 %v2211_v13, %v2210_v12 }
 0x746   :  { %3462 = vmatpush3.bf16.msra.mxu0 %v3461_v15  ;;  %v2212_v15 = vld [vmem:[#allocation17 + $0x140] sm:$0xff] }
 0x747   :  { %3463 = vmatprep.subr.bf16.mxu0 %v3871_v55  ;;  %v3485_v17 = vpack.c.bf16 %v2213_v16, %v2212_v15 }
 0x74a   :  { %3465 = vmatpush3.bf16.msra.mxu0 %v3464_v18  ;;  %v2215_v18 = vld [vmem:[#allocation17 + $0x158] sm:$0xff] }
 0x74b   :  { %3466 = vmatprep.subr.bf16.mxu0 %v3871_v55 }
 0x74e   :  { %3468 = vmatpush3.bf16.msra.mxu0 %v3467_v21  ;;  %v2217_v21 = vld [vmem:[#allocation17 + $0x168] sm:$0xff] }
 0x74f   :  { %3469 = vmatprep.subr.bf16.mxu0 %v3871_v55  ;;  %v3491_v22 = vpack.c.bf16 %v2217_v21, %v2216_v20 }
 0x752   :  { %3471 = vmatpush3.bf16.msra.mxu0 %v3470_v24  ;;  %v2219_v24 = vld [vmem:[#allocation17 + $0x178] sm:$0xff] }
 0x753   :  { %3194 = vmatprep.subr.mxu0 %v3873_v56 }
 0x808   :  { %v1777_v25 = vpop.f32.mrb[14].mxu0 }
 0x809   :  { %v1781_v27 = vadd.f32 %v1777_v25, %v1616_v61  ;;  %v3073_v28 = vpop.f32.mrb[15].mxu0  ;;  %v3446_v61 = vpack.c.bf16 %v1987_v60, %v1986_v59  ;;  %v3494_v25 = vpack.c.bf16 %v2219_v24, %v2218_v23 }
 0x80b   :  { %v1789_v29 = vadd.f32 %v2500_v26, %v1781_v27 }
 0x80d   :  { %vm1790_vm8 = vcmp.ge.f32.partialorder %v1789_v29, 0.0  ;;  %v1791_v30 = vmul.f32 0.2, %v1789_v29 }
 0x80f   :  { %v1792_v32 = vsel %vm1790_vm8, %v1789_v29, %v1791_v30 }
 0x810   :  { %v1800_v33 = vadd.f32 %v2501_v31, %v1792_v32 }
 0x812   :  { %3075 = vmatpush3.msk.msra.mxu1 %vm1806_vm9, %v1800_v33 }
 0x813   :  { %3077 = vmatmul.mubr.msk.f32.vlgmr.msra.gmra.mrb[16].mxu1 %vm1802_vm10, %v1801_v34  ;;  %3079 = vmatprep.subr.mxu1 %v3873_v56  ;;  %v2508_v34 = vld [vmem:[#allocation19] ss:$0 sm:$0xff] }
 0x814   :  { %3080 = vmatpush3.msk.msra.mxu1 %vm1806_vm9, %v1800_v33  ;;  %3081 = vmatprep.mubr.msk.f32.mxu1 %vm3872_vm2, %v3873_v56 }
 0x815   :  { %3424 = vmatprep.subr.bf16.mxu1 %v3871_v55 }
 0x817   :  { %3082 = vmatmul.mubr.msk.f32.vlgmr.msra.gmra.mrb[18].mxu1 %vm1802_vm10, %v1897_v37 }
 0x818   :  { %3426 = vmatpush3.bf16.msra.mxu1 %v3425_v38  ;;  %3116 = vmatprep.mubr.msk.f32.mxu1 %vm3872_vm2, %v3873_v56 }
 0x819   :  { %3427 = vmatprep.subr.bf16.mxu1 %v3871_v55 }
 0x81c   :  { %3429 = vmatpush3.bf16.msra.mxu1 %v3428_v41  ;;  %v2310_v41 = vld [vmem:[#allocation22] sm:$0x3] }
 0x81d   :  { %3430 = vmatprep.subr.bf16.mxu1 %v3871_v55 }
 0x820   :  { %3432 = vmatpush3.bf16.msra.mxu1 %v3431_v44 }
 0x821   :  { %3433 = vmatprep.subr.bf16.mxu1 %v3871_v55 }
 0x824   :  { %3435 = vmatpush3.bf16.msra.mxu1 %v3434_v47  ;;  %v2513_v47 = vld [vmem:[#allocation2] ss:$0 sm:$0xff] }
 0x825   :  { %3436 = vmatprep.subr.bf16.mxu1 %v3871_v55 }
 0x828   :  { %3438 = vmatpush3.bf16.msra.mxu1 %v3437_v50 }
 0x829   :  { %3439 = vmatprep.subr.bf16.mxu1 %v3871_v55 }
 0x82c   :  { %3441 = vmatpush3.bf16.msra.mxu1 %v3440_v53 }
 0x82d   :  { %3442 = vmatprep.subr.bf16.mxu1 %v3871_v55 }
 0x830   :  { %3444 = vmatpush3.bf16.msra.mxu1 %v3443_v58 }
 0x831   :  { %3445 = vmatprep.subr.bf16.mxu1 %v3871_v55 }
 0x834   :  { %3447 = vmatpush3.bf16.msra.mxu1 %v3446_v61 }
 0x835   :  { %3154 = vmatprep.subr.mxu1 %v3873_v56 }
 0x8e6   :  { %v1876_v62 = vpop.f32.mrb[16].mxu1 }
 0x8e7   :  { %v3078_v63 = vpop.f32.mrb[17].mxu1  ;;  %3152 = vmatmul.mubr.f32.vlgmr.msra.gmra.mrb[16].mxu0 %v1876_v62 }
 0x8e8   :  { %3196 = vmatprep.mubr.msk.f32.mxu0 %vm3872_vm2, %v3873_v56 }
 0x8ea   :  { %v1967_v2 = vpop.f32.mrb[18].mxu1 }
 0x8eb   :  { %v3083_v3 = vpop.f32.mrb[19].mxu1  ;;  %3117 = vmatmul.mubr.f32.vlgmr.msra.gmra.mrb[20].mxu1 %v1967_v2 }
 0x8ec   :  { %3155 = vmatpush3.msk.msra.mxu1 %vm1806_vm9, %v1800_v33  ;;  %3156 = vmatprep.mubr.msk.f32.mxu1 %vm3872_vm2, %v3873_v56 }
 0x8ed   :  { %3472 = vmatprep.subr.bf16.mxu1 %v3871_v55 }
 0x8ef   :  { %3157 = vmatmul.mubr.msk.f32.vlgmr.msra.gmra.mrb[22].mxu1 %vm1802_vm10, %v2129_v4 }
 0x8f0   :  { %3474 = vmatpush3.bf16.msra.mxu1 %v3473_v5  ;;  %3191 = vmatprep.mubr.msk.f32.mxu1 %vm3872_vm2, %v3873_v56  ;;  %v2214_v56 = vld [vmem:[#allocation17 + $0x150] sm:$0xff] }
 0x8f1   :  { %3475 = vmatprep.subr.bf16.mxu1 %v3871_v55  ;;  %v3488_v19 = vpack.c.bf16 %v2215_v18, %v2214_v56 }
 0x8f4   :  { %3477 = vmatpush3.bf16.msra.mxu1 %v3476_v8 }
 0x8f5   :  { %3478 = vmatprep.subr.bf16.mxu1 %v3871_v55 }
 0x8f8   :  { %3480 = vmatpush3.bf16.msra.mxu1 %v3479_v11 }
 0x8f9   :  { %3481 = vmatprep.subr.bf16.mxu1 %v3871_v55 }
 0x8fc   :  { %3483 = vmatpush3.bf16.msra.mxu1 %v3482_v14 }
 0x8fd   :  { %3484 = vmatprep.subr.bf16.mxu1 %v3871_v55 }
 0x900   :  { %3486 = vmatpush3.bf16.msra.mxu1 %v3485_v17 }
 0x901   :  { %3487 = vmatprep.subr.bf16.mxu1 %v3871_v55 }
 0x904   :  { %3489 = vmatpush3.bf16.msra.mxu1 %v3488_v19 }
 0x905   :  { %3490 = vmatprep.subr.bf16.mxu1 %v3871_v55 }
 0x908   :  { %3492 = vmatpush3.bf16.msra.mxu1 %v3491_v22 }
 0x909   :  { %3493 = vmatprep.subr.bf16.mxu1 %v3871_v55  ;;  %v2509_v55 = vld [vmem:[#allocation20] ss:$0 sm:$0xff] }
 0x90c   :  { %3495 = vmatpush3.bf16.msra.mxu1 %v3494_v25 }
 0x9ba   :  { %v2124_v26 = vpop.f32.mrb[16].mxu0 }
 0x9bb   :  { %v3153_v27 = vpop.f32.mrb[17].mxu0 }
 0x9be   :  { %v2054_v28 = vpop.f32.mrb[20].mxu1 }
 0x9bf   :  { %v2125_v29 = vadd.f32 %v2124_v26, %v2054_v28  ;;  %v3118_v30 = vpop.f32.mrb[21].mxu1 }
 0x9c2   :  { %v2199_v31 = vpop.f32.mrb[22].mxu1 }
 0x9c3   :  { %v3158_v32 = vpop.f32.mrb[23].mxu1  ;;  %3192 = vmatmul.mubr.f32.vlgmr.msra.gmra.mrb[24].mxu1 %v2199_v31 }
 0xa96   :  { %v2286_v33 = vpop.f32.mrb[24].mxu1 }
 0xa97   :  { %v2290_v35 = vadd.f32 %v2286_v33, %v2125_v29  ;;  %v3193_v36 = vpop.f32.mrb[25].mxu1 }
 0xa99   :  { %v2298_v37 = vadd.f32 %v2508_v34, %v2290_v35 }
 0xa9b   :  { %vm2299_vm11 = vcmp.ge.f32.partialorder %v2298_v37, 0.0  ;;  %v2300_v38 = vmul.f32 0.2, %v2298_v37 }
 0xa9d   :  { %v2301_v39 = vsel %vm2299_vm11, %v2298_v37, %v2300_v38 }
 0xa9e   :  { %v2309_v40 = vadd.f32 %v2509_v55, %v2301_v39 }
 0xaa0   :  { %3195 = vmatpush3.msk.msra.mxu0 %vm2315_vm12, %v2309_v40 }
 0xaa1   :  { %3197 = vmatmul.mubr.msk.f32.vlgmr.msra.gmra.mrb[18].mxu0 %vm2311_vm13, %v2310_v41 }
 0xb74   :  { %v2385_v43 = vpop.f32.mrb[18].mxu0 }
 0xb75   :  { %v2396_v44 = vmul.f32 %v2512_v42, %v2385_v43  ;;  %v3198_v45 = vpop.f32.mrb[19].mxu0 }
 0xb77   :  { %v2397_v46 = vsel %vm2315_vm12, %v2396_v44, 0.0 }
 0xb78   :  { %2398 = vadd.xlane.f32.xlu0 %v2397_v46 }
 0xc05   :  { %v2399_v48 = vpop.xlane.xlu0 %2398 }
 0xc06   :  { %v2407_v49 = vadd.f32 %v2513_v47, %v2399_v48 }
 0xc08   :  { %v2408_v50 = vsub.f32 0.0, %v2407_v49 }
 0xc0a   :  { %v2409_v51 = vmul.f32 1.442695, %v2408_v50 }
 0xc0c   :  { %3523 = vpow2.f32 %v2409_v51 }
 0xc16   :  { %v3524_v52 = vpop.eup %3523 }
 0xc17   :  { %v2411_v53 = vadd.f32 1.0, %v3524_v52 }
 0xc19   :  { %3525 = vrcp.f32 %v2411_v53 }
 0xc23   :  { %v3526_v54 = vpop.eup %3525 }
 0xc24   :  { %2415 = vst.msk [vmem:[%s4584_s20] sm:$0x3] %vm2414_vm14, %v3526_v54 }
 0xc25   :  { %2420 = vsyncpa [#allocation4], 1 }
 0xc26   :  { %2421 = vsyncpa [#allocation6], 1 }
 0xc27   :  { %2422 = vsyncpa [#allocation9], 1 }
 0xc28   :  { %2423 = vsyncpa [#allocation12], 1 }
 0xc29   :  { %2424 = vsyncpa [#allocation15], 1 }
 0xc2a   :  { %2425 = vsyncpa [#allocation18], 1 }
 0xc2b   :  { %2426 = vsyncpa [#allocation21], 1 }
 0xc2c   :  { %2427 = vsyncpa [#allocation24], 1 }

</bundles_post_ra>
